<compile_context>
chip_gen: v5e
topology: v5e:2x2
jax: 0.10.0
libtpu: 0.0.40
codegen_flags: <defaults>
</compile_context>

<pallas_src>
import jax
import jax.numpy as jnp
from jax.experimental import pallas as pl
from jax.experimental.pallas import tpu as pltpu


def _round_up(x: int, m: int) -> int:
    return ((x + m - 1) // m) * m


def _num_tensorcores() -> int:
    # v7x has 2 TensorCores per chip; v5e/v6e have 1.
    try:
        kind = jax.devices()[0].device_kind.lower()
    except Exception:
        return 1
    return 2 if "v7" in kind else 1


def char_embedding_kernel(xt_ref, embt_ref, w1t_ref, b1t_ref, w2_ref, b2_ref, out_ref):
    S, TB = xt_ref.shape
    Vp = embt_ref.shape[1]

    idx = xt_ref[...]                                          # (S, TB) int32
    vocab = jax.lax.broadcasted_iota(jnp.int32, (Vp, TB), 0)   # (Vp, TB)

    # counts[v, b] = #occurrences of token v in column b.
    # Unrolled VPU compare + int32 adds; single f32 convert after the loop.
    counts = jnp.zeros((Vp, TB), jnp.int32)
    for s in range(S):                                         # S is small & static
        counts = counts + (idx[s:s + 1, :] == vocab).astype(jnp.int32)

    countsf = counts.astype(jnp.float32) * (1.0 / S)           # fold mean scale here

    # mean(embedding(x), dim=1)^T == emb^T @ (counts / S)      (MXU, lane-dense)
    me_t = jnp.dot(embt_ref[...], countsf, preferred_element_type=jnp.float32)   # (Ep, TB)

    # fc1 + ReLU (transposed): h^T = w1^T @ mean^T + b1^T      (MXU + VPU)
    h_t = jnp.dot(w1t_ref[...], me_t, preferred_element_type=jnp.float32) + b1t_ref[...]
    h_t = jnp.maximum(h_t, 0.0)                                # (H, TB)

    # fc2 folded into a matmul -> lane-dense (1, TB) output; bias scalar in SMEM.
    out = jnp.dot(w2_ref[...], h_t, preferred_element_type=jnp.float32) + b2_ref[0]
    out_ref[...] = out.astype(out_ref.dtype)


def prepare_params(emb, w1, b1, w2, b2):
    """Pad + transpose parameters once (hoisted out of the per-call path)."""
    V, E = emb.shape
    H = w1.shape[1]
    Ep = _round_up(E, 128)                      # 200 -> 256 lane-dense embedding dim
    Vp = _round_up(V, 128)                      # lane-dense counts / MXU K dim

    emb_t = jnp.zeros((Ep, Vp), emb.dtype).at[:E, :V].set(emb.T)   # (Ep, Vp)
    w1_t = jnp.zeros((H, Ep), w1.dtype).at[:, :E].set(w1.T)        # (H, Ep)
    b1_t = b1.reshape(H, 1)                                        # (H, 1)
    return (emb_t, w1_t, b1_t, w2, b2)


@jax.jit
def char_embedding_forward(x, params):
    """x:(B,S) int; params from prepare_params() -> (B,1) f32."""
    emb_t, w1_t, b1_t, w2, b2 = params
    B, S = x.shape
    Ep, Vp = emb_t.shape
    H = w1_t.shape[0]

    # Grid sizing: 1 step on single-TC chips, >=2 parallel steps on dual-TC v7x.
    steps_target = _num_tensorcores()
    TB = min(512, _round_up(pl.cdiv(B, steps_target), 128))
    Bp = _round_up(B, TB)
    grid = (Bp // TB,)

    # Per-call pad: only the (small) transposed token matrix.
    x_t = jnp.zeros((S, Bp), jnp.int32).at[:, :B].set(x.T.astype(jnp.int32))

    flops = 2 * Bp * (Vp * Ep + Ep * H + H)
    bytes_accessed = 4 * (x_t.size + emb_t.size + w1_t.size + b1_t.size
                          + w2.size + b2.size + Bp)

    out = pl.pallas_call(
        char_embedding_kernel,
        out_shape=jax.ShapeDtypeStruct((1, Bp), jnp.float32),
        grid_spec=pl.GridSpec(
            grid=grid,
            in_specs=[
                pl.BlockSpec((S, TB), lambda i: (0, i)),              # x^T: batch-tiled
                pl.BlockSpec((Ep, Vp), lambda i: (0, 0)),             # emb^T: resident
                pl.BlockSpec((H, Ep), lambda i: (0, 0)),              # w1^T: resident
                pl.BlockSpec((H, 1), lambda i: (0, 0)),               # b1^T: resident
                pl.BlockSpec((1, H), lambda i: (0, 0)),               # w2 row: resident
                pl.BlockSpec(memory_space=pltpu.MemorySpace.SMEM),    # b2 scalar
            ],
            out_specs=pl.BlockSpec((1, TB), lambda i: (0, i)),        # lane-dense out
        ),
        compiler_params=pltpu.CompilerParams(
            dimension_semantics=("parallel",)),
        cost_estimate=pl.CostEstimate(flops=flops, transcendentals=0,
                                      bytes_accessed=bytes_accessed),
    )(x_t, emb_t, w1_t, b1_t, w2, b2)

    return out[0, :B].reshape(B, 1)


def reference_forward(x, emb, w1, b1, w2, b2):
    # Pure-JAX reference matching the PyTorch forward exactly (unpadded params).
    e = jnp.take(emb, x, axis=0)            # (B, S, E)
    m = jnp.mean(e, axis=1)                 # (B, E)
    h = jax.nn.relu(m @ w1 + b1)            # (B, H)
    return h @ w2.T + b2[None, :]           # (B, 1)


if __name__ == "__main__":
    # Shapes consistent with the module: vocab=32 (len(chars)+1), embedding_dim=200,
    # hidden=256, output=1; batch=256 / seq=8.
    V, E, H, O = 32, 200, 256, 1
    B, S = 256, 8

    key = jax.random.PRNGKey(0)
    k_x, k_emb, k_w1, k_b1, k_w2, k_b2 = jax.random.split(key, 6)

    x = jax.random.randint(k_x, (B, S), minval=0, maxval=V, dtype=jnp.int32)

    # Deterministic params (nn.Embedding ~ N(0,1); nn.Linear ~ U(-1/sqrt(fan_in), +)).
    emb = jax.random.normal(k_emb, (V, E), dtype=jnp.float32)
    lim1 = 1.0 / jnp.sqrt(E)
    w1 = jax.random.uniform(k_w1, (E, H), minval=-lim1, maxval=lim1, dtype=jnp.float32)
    b1 = jax.random.uniform(k_b1, (1, H), minval=-lim1, maxval=lim1, dtype=jnp.float32)
    lim2 = 1.0 / jnp.sqrt(H)
    w2 = jax.random.uniform(k_w2, (1, H), minval=-lim2, maxval=lim2, dtype=jnp.float32)
    b2 = jax.random.uniform(k_b2, (1,), minval=-lim2, maxval=lim2, dtype=jnp.float32)

    params = jax.block_until_ready(prepare_params(emb, w1, b1, w2, b2))  # padded once

    out = jax.block_until_ready(char_embedding_forward(x, params))
    ref = jax.block_until_ready(reference_forward(x, emb, w1, b1, w2, b2))

    assert out.shape == (B, 1), out.shape
    assert jnp.allclose(out, ref, atol=1e-4, rtol=1e-4), (out, ref)

    print("KERNEL_OK")
</pallas_src>

<mosaic_0001>
module attributes {stable_mosaic.version = 11 : i64} {
  func.func @char_embedding_kernel(%arg0: i32, %arg1: memref<8x256xi32, #tpu.memory_space<vmem>>, %arg2: memref<256x128xf32, #tpu.memory_space<vmem>>, %arg3: memref<256x256xf32, #tpu.memory_space<vmem>>, %arg4: memref<256x1xf32, #tpu.memory_space<vmem>>, %arg5: memref<1x256xf32, #tpu.memory_space<vmem>>, %arg6: memref<1xf32, #tpu.memory_space<smem>>, %arg7: memref<1x256xf32, #tpu.memory_space<vmem>>) attributes {dimension_semantics = [#tpu.dimension_semantics<parallel>], iteration_bounds = array<i64: 1>, scalar_prefetch = 0 : i64, scratch_operands = 0 : i64, tpu.core_type = #tpu.core_type<tc>, window_params = [{transform_indices = @transform_0, window_bounds = array<i64: 8, 256>}, {pipeline_mode = #tpu.pipeline_mode<synchronous>, transform_indices = @transform_1, window_bounds = array<i64: 256, 128>}, {pipeline_mode = #tpu.pipeline_mode<synchronous>, transform_indices = @transform_2, window_bounds = array<i64: 256, 256>}, {pipeline_mode = #tpu.pipeline_mode<synchronous>, transform_indices = @transform_3, window_bounds = array<i64: 256, 1>}, {pipeline_mode = #tpu.pipeline_mode<synchronous>, transform_indices = @transform_4, window_bounds = array<i64: 1, 256>}, {transform_indices = @transform_5, window_bounds = array<i64: 1>}, {transform_indices = @transform_6, window_bounds = array<i64: 1, 256>}]} {
    %c0 = arith.constant 0 : index
    %c0_0 = arith.constant 0 : index
    %0 = vector.load %arg1[%c0, %c0_0] : memref<8x256xi32, #tpu.memory_space<vmem>>, vector<8x256xi32>
    %1 = tpu.iota {dimensions = array<i32: 0>} : vector<128x256xi32>
    %c0_i32 = arith.constant 0 : i32
    %2 = vector.broadcast %c0_i32 : i32 to vector<128x256xi32>
    %3 = vector.extract_strided_slice %0 {offsets = [0, 0], sizes = [1, 256], strides = [1, 1]} : vector<8x256xi32> to vector<1x256xi32>
    %4 = vector.broadcast %3 : vector<1x256xi32> to vector<128x256xi32>
    %5 = arith.cmpi eq, %4, %1 : vector<128x256xi32>
    %6 = arith.extui %5 : vector<128x256xi1> to vector<128x256xi32>
    %7 = arith.addi %2, %6 : vector<128x256xi32>
    %8 = vector.extract_strided_slice %0 {offsets = [1, 0], sizes = [1, 256], strides = [1, 1]} : vector<8x256xi32> to vector<1x256xi32>
    %9 = vector.broadcast %8 : vector<1x256xi32> to vector<128x256xi32>
    %10 = arith.cmpi eq, %9, %1 : vector<128x256xi32>
    %11 = arith.extui %10 : vector<128x256xi1> to vector<128x256xi32>
    %12 = arith.addi %7, %11 : vector<128x256xi32>
    %13 = vector.extract_strided_slice %0 {offsets = [2, 0], sizes = [1, 256], strides = [1, 1]} : vector<8x256xi32> to vector<1x256xi32>
    %14 = vector.broadcast %13 : vector<1x256xi32> to vector<128x256xi32>
    %15 = arith.cmpi eq, %14, %1 : vector<128x256xi32>
    %16 = arith.extui %15 : vector<128x256xi1> to vector<128x256xi32>
    %17 = arith.addi %12, %16 : vector<128x256xi32>
    %18 = vector.extract_strided_slice %0 {offsets = [3, 0], sizes = [1, 256], strides = [1, 1]} : vector<8x256xi32> to vector<1x256xi32>
    %19 = vector.broadcast %18 : vector<1x256xi32> to vector<128x256xi32>
    %20 = arith.cmpi eq, %19, %1 : vector<128x256xi32>
    %21 = arith.extui %20 : vector<128x256xi1> to vector<128x256xi32>
    %22 = arith.addi %17, %21 : vector<128x256xi32>
    %23 = vector.extract_strided_slice %0 {offsets = [4, 0], sizes = [1, 256], strides = [1, 1]} : vector<8x256xi32> to vector<1x256xi32>
    %24 = vector.broadcast %23 : vector<1x256xi32> to vector<128x256xi32>
    %25 = arith.cmpi eq, %24, %1 : vector<128x256xi32>
    %26 = arith.extui %25 : vector<128x256xi1> to vector<128x256xi32>
    %27 = arith.addi %22, %26 : vector<128x256xi32>
    %28 = vector.extract_strided_slice %0 {offsets = [5, 0], sizes = [1, 256], strides = [1, 1]} : vector<8x256xi32> to vector<1x256xi32>
    %29 = vector.broadcast %28 : vector<1x256xi32> to vector<128x256xi32>
    %30 = arith.cmpi eq, %29, %1 : vector<128x256xi32>
    %31 = arith.extui %30 : vector<128x256xi1> to vector<128x256xi32>
    %32 = arith.addi %27, %31 : vector<128x256xi32>
    %33 = vector.extract_strided_slice %0 {offsets = [6, 0], sizes = [1, 256], strides = [1, 1]} : vector<8x256xi32> to vector<1x256xi32>
    %34 = vector.broadcast %33 : vector<1x256xi32> to vector<128x256xi32>
    %35 = arith.cmpi eq, %34, %1 : vector<128x256xi32>
    %36 = arith.extui %35 : vector<128x256xi1> to vector<128x256xi32>
    %37 = arith.addi %32, %36 : vector<128x256xi32>
    %38 = vector.extract_strided_slice %0 {offsets = [7, 0], sizes = [1, 256], strides = [1, 1]} : vector<8x256xi32> to vector<1x256xi32>
    %39 = vector.broadcast %38 : vector<1x256xi32> to vector<128x256xi32>
    %40 = arith.cmpi eq, %39, %1 : vector<128x256xi32>
    %41 = arith.extui %40 : vector<128x256xi1> to vector<128x256xi32>
    %42 = arith.addi %37, %41 : vector<128x256xi32>
    %43 = arith.sitofp %42 : vector<128x256xi32> to vector<128x256xf32>
    %cst = arith.constant 1.250000e-01 : f32
    %44 = vector.broadcast %cst : f32 to vector<128x256xf32>
    %45 = arith.mulf %43, %44 : vector<128x256xf32>
    %c0_1 = arith.constant 0 : index
    %c0_2 = arith.constant 0 : index
    %46 = vector.load %arg2[%c0_1, %c0_2] : memref<256x128xf32, #tpu.memory_space<vmem>>, vector<256x128xf32>
    %cst_3 = arith.constant dense<0.000000e+00> : vector<256x256xf32>
    %47 = tpu.matmul %46, %45, %cst_3 {dimension_numbers = #tpu.dot_dimension_numbers<[1], [0], [0], [1], [0, 0, 1, 1], [], []>} : vector<256x128xf32>, vector<128x256xf32>, vector<256x256xf32> -> vector<256x256xf32>
    %c0_4 = arith.constant 0 : index
    %c0_5 = arith.constant 0 : index
    %48 = vector.load %arg3[%c0_4, %c0_5] : memref<256x256xf32, #tpu.memory_space<vmem>>, vector<256x256xf32>
    %cst_6 = arith.constant dense<0.000000e+00> : vector<256x256xf32>
    %49 = tpu.matmul %48, %47, %cst_6 {dimension_numbers = #tpu.dot_dimension_numbers<[1], [0], [0], [1], [0, 0, 1, 1], [], []>} : vector<256x256xf32>, vector<256x256xf32>, vector<256x256xf32> -> vector<256x256xf32>
    %c0_7 = arith.constant 0 : index
    %c0_8 = arith.constant 0 : index
    %50 = vector.load %arg4[%c0_7, %c0_8] : memref<256x1xf32, #tpu.memory_space<vmem>>, vector<256x1xf32>
    %51 = vector.broadcast %50 : vector<256x1xf32> to vector<256x256xf32>
    %52 = arith.addf %49, %51 : vector<256x256xf32>
    %cst_9 = arith.constant 0.000000e+00 : f32
    %53 = vector.broadcast %cst_9 : f32 to vector<256x256xf32>
    %54 = arith.maximumf %52, %53 : vector<256x256xf32>
    %c0_10 = arith.constant 0 : index
    %c0_11 = arith.constant 0 : index
    %55 = vector.load %arg5[%c0_10, %c0_11] : memref<1x256xf32, #tpu.memory_space<vmem>>, vector<1x256xf32>
    %cst_12 = arith.constant dense<0.000000e+00> : vector<1x256xf32>
    %56 = tpu.matmul %55, %54, %cst_12 {dimension_numbers = #tpu.dot_dimension_numbers<[1], [0], [0], [1], [0, 0, 1, 1], [], []>} : vector<1x256xf32>, vector<256x256xf32>, vector<1x256xf32> -> vector<1x256xf32>
    %c0_13 = arith.constant 0 : index
    %57 = memref.load %arg6[%c0_13] : memref<1xf32, #tpu.memory_space<smem>>
    %58 = vector.broadcast %57 : f32 to vector<1x256xf32>
    %59 = arith.addf %56, %58 : vector<1x256xf32>
    %c0_14 = arith.constant 0 : index
    %c0_15 = arith.constant 0 : index
    %60 = vector.load %arg7[%c0_14, %c0_15] : memref<1x256xf32, #tpu.memory_space<vmem>>, vector<1x256xf32>
    tpu.vector_store %arg7[%c0_14, %c0_15], %59 {strides = array<i32>} : memref<1x256xf32, #tpu.memory_space<vmem>>, vector<1x256xf32>,
    return
  }
  func.func @transform_0(%arg0: i32) -> (i32, i32) {
    %c0_i32 = arith.constant 0 : i32
    %c0_i32_0 = arith.constant 0 : i32
    return %c0_i32, %arg0 : i32, i32
  }
  func.func @transform_1(%arg0: i32) -> (i32, i32) {
    %c0_i32 = arith.constant 0 : i32
    %c0_i32_0 = arith.constant 0 : i32
    %c0_i32_1 = arith.constant 0 : i32
    return %c0_i32, %c0_i32_0 : i32, i32
  }
  func.func @transform_2(%arg0: i32) -> (i32, i32) {
    %c0_i32 = arith.constant 0 : i32
    %c0_i32_0 = arith.constant 0 : i32
    %c0_i32_1 = arith.constant 0 : i32
    return %c0_i32, %c0_i32_0 : i32, i32
  }
  func.func @transform_3(%arg0: i32) -> (i32, i32) {
    %c0_i32 = arith.constant 0 : i32
    %c0_i32_0 = arith.constant 0 : i32
    %c0_i32_1 = arith.constant 0 : i32
    return %c0_i32, %c0_i32_0 : i32, i32
  }
  func.func @transform_4(%arg0: i32) -> (i32, i32) {
    %c0_i32 = arith.constant 0 : i32
    %c0_i32_0 = arith.constant 0 : i32
    %c0_i32_1 = arith.constant 0 : i32
    return %c0_i32, %c0_i32_0 : i32, i32
  }
  func.func @transform_5(%arg0: i32) -> i32 {
    %c0_i32 = arith.constant 0 : i32
    %c0_i32_0 = arith.constant 0 : i32
    return %c0_i32 : i32
  }
  func.func @transform_6(%arg0: i32) -> (i32, i32) {
    %c0_i32 = arith.constant 0 : i32
    %c0_i32_0 = arith.constant 0 : i32
    return %c0_i32, %arg0 : i32, i32
  }
}

</mosaic_0001>

<bundles_post_ra>
// kernel: char_embedding_forward.1
= control target key start
LH: loop header
LB: loop body
LE: loop exit
PB: predicated region body
PF: predicated region fallthrough
CT: control target
= control target key end

     0   :  { %12 = vsyncpa [#allocation4], 0  ;;  %s3763_s0 = inlined_call_operand.hbm [shape: s32[8,256], index: 0, kind: input, shape index: {}]   ;;  %s3764_s1 = inlined_call_operand.vmem [shape: f32[256,128], index: 1, kind: input, shape index: {}]   ;;  %s3765_s2 = inlined_call_operand.hbm [shape: f32[256,256], index: 2, kind: input, shape index: {}]   ;;  %s3766_s3 = inlined_call_operand.vmem [shape: f32[256,1], index: 3, kind: input, shape index: {}]   ;;  %s3767_s4 = inlined_call_operand.vmem [shape: f32[1,256], index: 4, kind: input, shape index: {}]   ;;  %s3768_s5 = inlined_call_operand.<no memory space> [shape: f32[1], index: 5, kind: input, shape index: {}]   ;;  %s3769_s6 = inlined_call_operand.hbm [shape: f32[1,256], index: 6, kind: output, shape index: {}]  }
   0x1   :  { %13 = vsyncpa [#allocation7], 0 }
   0x2   :  { %14 = vsyncpa [#allocation5], 0  ;;  %s20_s23 = sshll.u32 %s3763_s0, 4  ;;  %s2156_s24 = smov [#allocation3]   ;;  %s21_s23 = int_to_ptr.hbm [resolvable:$true] %s20_s23 }
   0x3   :  { %s22_s25 = sshll.u32 %s2156_s24, 4  ;;  %s32_s28 = sshll.u32 %s3765_s2, 4  ;;  %s23_s25 = int_to_ptr.vmem [resolvable:$true] %s22_s25  ;;  %s33_s28 = int_to_ptr.hbm [resolvable:$true] %s32_s28 }
   0x4   :  { %25 = dma.hbm_to_vmem [thread:$0]  %s21_s23, 256, %s23_s25, [#allocation4]  }
   0x5   :  { %s2157_s29 = smov [#allocation6]   ;;  %s2158_s7 = smov 256  }
   0x6   :  { %s34_s30 = sshll.u32 %s2157_s29, 4  ;;  %s2159_s8 = smov 16   ;;  %s35_s30 = int_to_ptr.vmem [resolvable:$true] %s34_s30 }
   0x7   :  { %40 = dma.hbm_to_vmem [thread:$0]  %s33_s28, 8192, %s35_s30, [#allocation7], %s2158_s7, %s2158_s7, %s2159_s8  }
   0x8   :  { %2150 = dma.done.wait [#allocation4], 256  }
   0x9   :  { %2151 = vsyncadd [#allocation4], 4294967040 }
   0xa   :  { %2152 = dma.done.wait [#allocation7], 8192  }
   0xb   :  { %2153 = vsyncadd [#allocation7], 4294959104  ;;  %v3770_v0 = vlaneseq  ;;  %v2160_v1 = vmov 0   ;;  %v55_v4 = vld [vmem:[#allocation3] sm:$0xff]  ;;  %v56_v17 = vld [vmem:[#allocation3 + $0x8] sm:$0xff]  ;;  %s2161_s30 = smov [#allocation8]  }
   0xc   :  { %2075 = vset.pattern.permute.xlu0 %v2160_v1  ;;  %2077 = vset.pattern.permute.xlu2 %v2160_v1  ;;  %v2215_v6 = vperm.slane %v55_v4, 0  ;;  %v2217_v7 = vperm.slane %v55_v4, 1  ;;  %v2219_v8 = vperm.slane %v55_v4, 2  ;;  %v2221_v9 = vperm.slane %v55_v4, 3  ;;  %s2024_s7 = sshll.u32 %s2161_s30, 4  ;;  %s2026_s2 = sshll.u32 %s3769_s6, 4  ;;  %s2025_s7 = int_to_ptr.vmem [resolvable:$true] %s2024_s7  ;;  %s2027_s2 = int_to_ptr.hbm [resolvable:$true] %s2026_s2 }
   0xd   :  { %v2206_v2 = vshrl.u32 %v3770_v0, 7  ;;  %2076 = vset.pattern.permute.xlu1 %v2160_v1  ;;  %v2223_v10 = vperm.slane %v55_v4, 4  ;;  %v2225_v11 = vperm.slane %v55_v4, 5  ;;  %v2227_v12 = vperm.slane %v55_v4, 6  ;;  %v1197_v0 = vld [vmem:[#allocation6 + $0x188] sm:$0xff] }
   0xe   :  { %v2229_v13 = vperm.slane %v55_v4, 7  ;;  %v2257_v25 = vperm.slane %v56_v17, 0  ;;  %v2259_v26 = vperm.slane %v56_v17, 1  ;;  %v2261_v27 = vperm.slane %v56_v17, 2 }
   0xf   :  { %v2210_v3 = vadd.s32 120, %v2206_v2  ;;  %v2213_v5 = vadd.s32 112, %v2206_v2  ;;  %v2243_v18 = vadd.s32 104, %v2206_v2  ;;  %v2263_v28 = vperm.slane %v56_v17, 3 }
  0x10   :  { %v2265_v29 = vperm.slane %v56_v17, 4  ;;  %v2267_v30 = vperm.slane %v56_v17, 5  ;;  %v2273_v32 = vperm.slane %v56_v17, 6  ;;  %v2289_v39 = vperm.slane %v56_v17, 7 }
  0x11   :  { %vm106_vm0 = vcmp.eq.s32.totalorder %v2215_v6, %v2210_v3  ;;  %vm172_vm1 = vcmp.eq.s32.totalorder %v2217_v7, %v2210_v3  ;;  %vm270_vm2 = vcmp.eq.s32.totalorder %v2219_v8, %v2210_v3  ;;  %vm368_vm3 = vcmp.eq.s32.totalorder %v2221_v9, %v2210_v3 }
  0x12   :  { %v138_v14 = vsel %vm106_vm0, 1, %v2160_v1  ;;  %v204_v15 = vsel %vm172_vm1, 1, %v2160_v1  ;;  %v302_v16 = vsel %vm270_vm2, 1, %v2160_v1  ;;  %vm466_vm4 = vcmp.eq.s32.totalorder %v2223_v10, %v2210_v3 }
  0x13   :  { %v236_v19 = vadd.s32 %v204_v15, %v138_v14  ;;  %vm564_vm5 = vcmp.eq.s32.totalorder %v2225_v11, %v2210_v3  ;;  %vm662_vm6 = vcmp.eq.s32.totalorder %v2227_v12, %v2210_v3  ;;  %v400_v20 = vsel %vm368_vm3, 1, %v2160_v1 }
  0x14   :  { %v498_v21 = vsel %vm466_vm4, 1, %v2160_v1  ;;  %v596_v22 = vsel %vm564_vm5, 1, %v2160_v1  ;;  %v694_v23 = vsel %vm662_vm6, 1, %v2160_v1  ;;  %vm760_vm7 = vcmp.eq.s32.totalorder %v2229_v13, %v2210_v3 }
  0x15   :  { %v334_v24 = vadd.s32 %v302_v16, %v236_v19  ;;  %vm107_vm8 = vcmp.eq.s32.totalorder %v2257_v25, %v2210_v3  ;;  %vm173_vm9 = vcmp.eq.s32.totalorder %v2259_v26, %v2210_v3  ;;  %vm271_vm10 = vcmp.eq.s32.totalorder %v2261_v27, %v2210_v3 }
  0x16   :  { %v139_v33 = vsel %vm107_vm8, 1, %v2160_v1  ;;  %v205_v34 = vsel %vm173_vm9, 1, %v2160_v1  ;;  %vm369_vm11 = vcmp.eq.s32.totalorder %v2263_v28, %v2210_v3  ;;  %v303_v37 = vsel %vm271_vm10, 1, %v2160_v1 }
  0x17   :  { %v432_v31 = vadd.s32 %v400_v20, %v334_v24  ;;  %v237_v36 = vadd.s32 %v205_v34, %v139_v33  ;;  %v401_v38 = vsel %vm369_vm11, 1, %v2160_v1  ;;  %vm467_vm12 = vcmp.eq.s32.totalorder %v2265_v29, %v2210_v3 }
  0x18   :  { %vm565_vm13 = vcmp.eq.s32.totalorder %v2267_v30, %v2210_v3  ;;  %vm663_vm14 = vcmp.eq.s32.totalorder %v2273_v32, %v2210_v3  ;;  %v792_v41 = vsel %vm760_vm7, 1, %v2160_v1  ;;  %v499_v43 = vsel %vm467_vm12, 1, %v2160_v1 }
  0x19   :  { %v530_v35 = vadd.s32 %v498_v21, %v432_v31  ;;  %v335_v42 = vadd.s32 %v303_v37, %v237_v36  ;;  %v597_v44 = vsel %vm565_vm13, 1, %v2160_v1  ;;  %v695_v45 = vsel %vm663_vm14, 1, %v2160_v1 }
  0x1a   :  { %vm104_vm15 = vcmp.eq.s32.totalorder %v2215_v6, %v2213_v5  ;;  %vm170_vm0 = vcmp.eq.s32.totalorder %v2217_v7, %v2213_v5  ;;  %vm761_vm1 = vcmp.eq.s32.totalorder %v2289_v39, %v2210_v3  ;;  %vm268_vm2 = vcmp.eq.s32.totalorder %v2219_v8, %v2213_v5 }
  0x1b   :  { %v628_v40 = vadd.s32 %v596_v22, %v530_v35  ;;  %v433_v47 = vadd.s32 %v401_v38, %v335_v42  ;;  %v136_v48 = vsel %vm104_vm15, 1, %v2160_v1  ;;  %v202_v49 = vsel %vm170_vm0, 1, %v2160_v1 }
  0x1c   :  { %vm366_vm3 = vcmp.eq.s32.totalorder %v2221_v9, %v2213_v5  ;;  %vm464_vm4 = vcmp.eq.s32.totalorder %v2223_v10, %v2213_v5  ;;  %v234_v52 = vadd.s32 %v202_v49, %v136_v48  ;;  %v300_v53 = vsel %vm268_vm2, 1, %v2160_v1 }
  0x1d   :  { %v726_v46 = vadd.s32 %v694_v23, %v628_v40  ;;  %v531_v51 = vadd.s32 %v499_v43, %v433_v47  ;;  %v793_v54 = vsel %vm761_vm1, 1, %v2160_v1  ;;  %v398_v55 = vsel %vm366_vm3, 1, %v2160_v1 }
  0x1e   :  { %vm562_vm5 = vcmp.eq.s32.totalorder %v2225_v11, %v2213_v5  ;;  %vm660_vm6 = vcmp.eq.s32.totalorder %v2227_v12, %v2213_v5  ;;  %v332_v58 = vadd.s32 %v300_v53, %v234_v52  ;;  %v496_v59 = vsel %vm464_vm4, 1, %v2160_v1 }
  0x1f   :  { %v824_v50 = vadd.s32 %v792_v41, %v726_v46  ;;  %v629_v57 = vadd.s32 %v597_v44, %v531_v51  ;;  %v594_v60 = vsel %vm562_vm5, 1, %v2160_v1  ;;  %v692_v61 = vsel %vm660_vm6, 1, %v2160_v1 }
  0x20   :  { %vm105_vm7 = vcmp.eq.s32.totalorder %v2257_v25, %v2213_v5  ;;  %vm171_vm8 = vcmp.eq.s32.totalorder %v2259_v26, %v2213_v5  ;;  %v430_v3 = vadd.s32 %v398_v55, %v332_v58  ;;  %vm758_vm9 = vcmp.eq.s32.totalorder %v2229_v13, %v2213_v5 }
  0x21   :  { %v856_v56 = vcvt.s32.f32 %v824_v50  ;;  %v727_v63 = vadd.s32 %v695_v45, %v629_v57  ;;  %v137_v4 = vsel %vm105_vm7, 1, %v2160_v1  ;;  %v203_v14 = vsel %vm171_vm8, 1, %v2160_v1 }
  0x22   :  { %vm269_vm10 = vcmp.eq.s32.totalorder %v2261_v27, %v2213_v5  ;;  %vm367_vm11 = vcmp.eq.s32.totalorder %v2263_v28, %v2213_v5  ;;  %v528_v16 = vadd.s32 %v496_v59, %v430_v3  ;;  %v235_v17 = vadd.s32 %v203_v14, %v137_v4 }
  0x23   :  { %v888_v62 = vmul.f32 0.125, %v856_v56  ;;  %v825_v15 = vadd.s32 %v793_v54, %v727_v63  ;;  %v301_v19 = vsel %vm269_vm10, 1, %v2160_v1  ;;  %v399_v20 = vsel %vm367_vm11, 1, %v2160_v1 }
  0x24   :  { %vm465_vm12 = vcmp.eq.s32.totalorder %v2265_v29, %v2213_v5  ;;  %vm563_vm13 = vcmp.eq.s32.totalorder %v2267_v30, %v2213_v5  ;;  %vm661_vm14 = vcmp.eq.s32.totalorder %v2273_v32, %v2213_v5  ;;  %v626_v22 = vadd.s32 %v594_v60, %v528_v16 }
  0x25   :  { %922 = vmatpush.msra.mxu0 %v888_v62  ;;  %2037 = vmatpush.msra.mxu2 %v888_v62  ;;  %v857_v21 = vcvt.s32.f32 %v825_v15  ;;  %v790_v23 = vsel %vm758_vm9, 1, %v2160_v1  ;;  %v333_v24 = vadd.s32 %v301_v19, %v235_v17  ;;  %v497_v31 = vsel %vm465_vm12, 1, %v2160_v1 }
  0x26   :  { %v595_v33 = vsel %vm563_vm13, 1, %v2160_v1  ;;  %v693_v34 = vsel %vm661_vm14, 1, %v2160_v1  ;;  %vm102_vm15 = vcmp.eq.s32.totalorder %v2215_v6, %v2243_v18  ;;  %v724_v36 = vadd.s32 %v692_v61, %v626_v22 }
  0x27   :  { %v889_v35 = vmul.f32 0.125, %v857_v21  ;;  %v431_v37 = vadd.s32 %v399_v20, %v333_v24  ;;  %vm759_vm0 = vcmp.eq.s32.totalorder %v2289_v39, %v2213_v5  ;;  %v134_v38 = vsel %vm102_vm15, 1, %v2160_v1 }
  0x28   :  { %vm168_vm1 = vcmp.eq.s32.totalorder %v2217_v7, %v2243_v18  ;;  %vm266_vm2 = vcmp.eq.s32.totalorder %v2219_v8, %v2243_v18  ;;  %vm364_vm3 = vcmp.eq.s32.totalorder %v2221_v9, %v2243_v18  ;;  %v822_v40 = vadd.s32 %v790_v23, %v724_v36 }
  0x29   :  { %1035 = vmatpush.msra.mxu1 %v889_v35  ;;  %v529_v41 = vadd.s32 %v497_v31, %v431_v37  ;;  %v200_v42 = vsel %vm168_vm1, 1, %v2160_v1  ;;  %v298_v43 = vsel %vm266_vm2, 1, %v2160_v1  ;;  %2053 = vmatpush.msra.mxu3 %v889_v35  ;;  %v791_v5 = vsel %vm759_vm0, 1, %v2160_v1 }
  0x2a   :  { %v232_v44 = vadd.s32 %v200_v42, %v134_v38  ;;  %vm462_vm4 = vcmp.eq.s32.totalorder %v2223_v10, %v2243_v18  ;;  %vm560_vm5 = vcmp.eq.s32.totalorder %v2225_v11, %v2243_v18  ;;  %v854_v45 = vcvt.s32.f32 %v822_v40 }
  0x2b   :  { %v627_v46 = vadd.s32 %v595_v33, %v529_v41  ;;  %v396_v47 = vsel %vm364_vm3, 1, %v2160_v1  ;;  %v494_v48 = vsel %vm462_vm4, 1, %v2160_v1  ;;  %v592_v50 = vsel %vm560_vm5, 1, %v2160_v1 }
  0x2c   :  { %v330_v49 = vadd.s32 %v298_v43, %v232_v44  ;;  %vm658_vm6 = vcmp.eq.s32.totalorder %v2227_v12, %v2243_v18  ;;  %vm103_vm7 = vcmp.eq.s32.totalorder %v2257_v25, %v2243_v18  ;;  %v886_v51 = vmul.f32 0.125, %v854_v45 }
  0x2d   :  { %v725_v52 = vadd.s32 %v693_v34, %v627_v46  ;;  %v690_v53 = vsel %vm658_vm6, 1, %v2160_v1  ;;  %vm756_vm8 = vcmp.eq.s32.totalorder %v2229_v13, %v2243_v18  ;;  %v135_v55 = vsel %vm103_vm7, 1, %v2160_v1 }
  0x2e   :  { %v428_v54 = vadd.s32 %v396_v47, %v330_v49  ;;  %vm169_vm9 = vcmp.eq.s32.totalorder %v2259_v26, %v2243_v18  ;;  %vm267_vm10 = vcmp.eq.s32.totalorder %v2261_v27, %v2243_v18  ;;  %923 = vmatpush.msra.mxu0 %v886_v51  ;;  %2038 = vmatpush.msra.mxu2 %v886_v51  ;;  %v788_v60 = vsel %vm756_vm8, 1, %v2160_v1 }
  0x2f   :  { %v823_v56 = vadd.s32 %v791_v5, %v725_v52  ;;  %v201_v57 = vsel %vm169_vm9, 1, %v2160_v1  ;;  %v299_v58 = vsel %vm267_vm10, 1, %v2160_v1  ;;  %vm365_vm11 = vcmp.eq.s32.totalorder %v2263_v28, %v2243_v18 }
  0x30   :  { %v526_v59 = vadd.s32 %v494_v48, %v428_v54  ;;  %v233_v61 = vadd.s32 %v201_v57, %v135_v55  ;;  %vm463_vm12 = vcmp.eq.s32.totalorder %v2265_v29, %v2243_v18  ;;  %v397_v63 = vsel %vm365_vm11, 1, %v2160_v1 }
  0x31   :  { %v855_v62 = vcvt.s32.f32 %v823_v56  ;;  %vm561_vm13 = vcmp.eq.s32.totalorder %v2267_v30, %v2243_v18  ;;  %vm659_vm14 = vcmp.eq.s32.totalorder %v2273_v32, %v2243_v18  ;;  %v495_v14 = vsel %vm463_vm12, 1, %v2160_v1 }
  0x32   :  { %v624_v3 = vadd.s32 %v592_v50, %v526_v59  ;;  %v331_v4 = vadd.s32 %v299_v58, %v233_v61  ;;  %v593_v15 = vsel %vm561_vm13, 1, %v2160_v1  ;;  %v691_v17 = vsel %vm659_vm14, 1, %v2160_v1 }
  0x33   :  { %v887_v16 = vmul.f32 0.125, %v855_v62  ;;  %vm757_vm15 = vcmp.eq.s32.totalorder %v2289_v39, %v2243_v18  ;;  %v2400_v19 = vadd.s32 96, %v2206_v2  ;;  %v2404_v23 = vadd.s32 88, %v2206_v2 }
  0x34   :  { %v722_v20 = vadd.s32 %v690_v53, %v624_v3  ;;  %v429_v21 = vadd.s32 %v397_v63, %v331_v4  ;;  %v789_v22 = vsel %vm757_vm15, 1, %v2160_v1  ;;  %v2420_v36 = vadd.s32 80, %v2206_v2 }
  0x35   :  { %1036 = vmatpush.msra.mxu1 %v887_v16  ;;  %vm100_vm0 = vcmp.eq.s32.totalorder %v2215_v6, %v2400_v19  ;;  %vm166_vm1 = vcmp.eq.s32.totalorder %v2217_v7, %v2400_v19  ;;  %vm264_vm2 = vcmp.eq.s32.totalorder %v2219_v8, %v2400_v19  ;;  %vm362_vm3 = vcmp.eq.s32.totalorder %v2221_v9, %v2400_v19 }
  0x36   :  { %v820_v18 = vadd.s32 %v788_v60, %v722_v20  ;;  %v527_v24 = vadd.s32 %v495_v14, %v429_v21  ;;  %v132_v31 = vsel %vm100_vm0, 1, %v2160_v1  ;;  %v198_v33 = vsel %vm166_vm1, 1, %v2160_v1  ;;  %2054 = vmatpush.msra.mxu3 %v887_v16 }
  0x37   :  { %v230_v34 = vadd.s32 %v198_v33, %v132_v31  ;;  %v296_v35 = vsel %vm264_vm2, 1, %v2160_v1  ;;  %vm460_vm4 = vcmp.eq.s32.totalorder %v2223_v10, %v2400_v19  ;;  %v394_v40 = vsel %vm362_vm3, 1, %v2160_v1 }
  0x38   :  { %v852_v37 = vcvt.s32.f32 %v820_v18  ;;  %v625_v38 = vadd.s32 %v593_v15, %v527_v24  ;;  %vm558_vm5 = vcmp.eq.s32.totalorder %v2225_v11, %v2400_v19  ;;  %v492_v42 = vsel %vm460_vm4, 1, %v2160_v1 }
  0x39   :  { %v328_v41 = vadd.s32 %v296_v35, %v230_v34  ;;  %v590_v43 = vsel %vm558_vm5, 1, %v2160_v1  ;;  %vm656_vm6 = vcmp.eq.s32.totalorder %v2227_v12, %v2400_v19  ;;  %vm754_vm7 = vcmp.eq.s32.totalorder %v2229_v13, %v2400_v19 }
  0x3a   :  { %v884_v5 = vmul.f32 0.125, %v852_v37  ;;  %v723_v44 = vadd.s32 %v691_v17, %v625_v38  ;;  %v688_v45 = vsel %vm656_vm6, 1, %v2160_v1  ;;  %vm101_vm8 = vcmp.eq.s32.totalorder %v2257_v25, %v2400_v19 }
  0x3b   :  { %v426_v46 = vadd.s32 %v394_v40, %v328_v41  ;;  %vm167_vm9 = vcmp.eq.s32.totalorder %v2259_v26, %v2400_v19  ;;  %vm265_vm10 = vcmp.eq.s32.totalorder %v2261_v27, %v2400_v19  ;;  %v133_v48 = vsel %vm101_vm8, 1, %v2160_v1 }
  0x3c   :  { %924 = vmatpush.msra.mxu0 %v884_v5  ;;  %2039 = vmatpush.msra.mxu2 %v884_v5  ;;  %v821_v47 = vadd.s32 %v789_v22, %v723_v44  ;;  %v199_v49 = vsel %vm167_vm9, 1, %v2160_v1  ;;  %v297_v50 = vsel %vm265_vm10, 1, %v2160_v1  ;;  %vm363_vm11 = vcmp.eq.s32.totalorder %v2263_v28, %v2400_v19 }
  0x3d   :  { %v524_v51 = vadd.s32 %v492_v42, %v426_v46  ;;  %v231_v52 = vadd.s32 %v199_v49, %v133_v48  ;;  %vm461_vm12 = vcmp.eq.s32.totalorder %v2265_v29, %v2400_v19  ;;  %v786_v54 = vsel %vm754_vm7, 1, %v2160_v1 }
  0x3e   :  { %v853_v53 = vcvt.s32.f32 %v821_v47  ;;  %v395_v55 = vsel %vm363_vm11, 1, %v2160_v1  ;;  %vm559_vm13 = vcmp.eq.s32.totalorder %v2267_v30, %v2400_v19  ;;  %v493_v58 = vsel %vm461_vm12, 1, %v2160_v1 }
  0x3f   :  { %v622_v56 = vadd.s32 %v590_v43, %v524_v51  ;;  %v329_v57 = vadd.s32 %v297_v50, %v231_v52  ;;  %vm657_vm14 = vcmp.eq.s32.totalorder %v2273_v32, %v2400_v19  ;;  %v591_v60 = vsel %vm559_vm13, 1, %v2160_v1 }
  0x40   :  { %v885_v59 = vmul.f32 0.125, %v853_v53  ;;  %v689_v61 = vsel %vm657_vm14, 1, %v2160_v1  ;;  %vm98_vm15 = vcmp.eq.s32.totalorder %v2215_v6, %v2404_v23  ;;  %vm755_vm0 = vcmp.eq.s32.totalorder %v2289_v39, %v2400_v19 }
  0x41   :  { %v720_v62 = vadd.s32 %v688_v45, %v622_v56  ;;  %v427_v63 = vadd.s32 %v395_v55, %v329_v57  ;;  %v130_v3 = vsel %vm98_vm15, 1, %v2160_v1  ;;  %vm164_vm1 = vcmp.eq.s32.totalorder %v2217_v7, %v2404_v23 }
  0x42   :  { %1037 = vmatpush.msra.mxu1 %v885_v59  ;;  %vm262_vm2 = vcmp.eq.s32.totalorder %v2219_v8, %v2404_v23  ;;  %vm360_vm3 = vcmp.eq.s32.totalorder %v2221_v9, %v2404_v23  ;;  %vm458_vm4 = vcmp.eq.s32.totalorder %v2223_v10, %v2404_v23  ;;  %v196_v15 = vsel %vm164_vm1, 1, %v2160_v1  ;;  %2055 = vmatpush.msra.mxu3 %v885_v59 }
  0x43   :  { %v818_v4 = vadd.s32 %v786_v54, %v720_v62  ;;  %v525_v14 = vadd.s32 %v493_v58, %v427_v63  ;;  %v294_v16 = vsel %vm262_vm2, 1, %v2160_v1  ;;  %v787_v17 = vsel %vm755_vm0, 1, %v2160_v1 }
  0x44   :  { %v228_v19 = vadd.s32 %v196_v15, %v130_v3  ;;  %v392_v20 = vsel %vm360_vm3, 1, %v2160_v1  ;;  %vm556_vm5 = vcmp.eq.s32.totalorder %v2225_v11, %v2404_v23  ;;  %v490_v18 = vsel %vm458_vm4, 1, %v2160_v1 }
  0x45   :  { %v850_v21 = vcvt.s32.f32 %v818_v4  ;;  %v623_v22 = vadd.s32 %v591_v60, %v525_v14  ;;  %vm654_vm6 = vcmp.eq.s32.totalorder %v2227_v12, %v2404_v23  ;;  %v588_v31 = vsel %vm556_vm5, 1, %v2160_v1 }
  0x46   :  { %v326_v24 = vadd.s32 %v294_v16, %v228_v19  ;;  %vm752_vm7 = vcmp.eq.s32.totalorder %v2229_v13, %v2404_v23  ;;  %vm99_vm8 = vcmp.eq.s32.totalorder %v2257_v25, %v2404_v23  ;;  %v686_v35 = vsel %vm654_vm6, 1, %v2160_v1 }
  0x47   :  { %v882_v33 = vmul.f32 0.125, %v850_v21  ;;  %v721_v34 = vadd.s32 %v689_v61, %v623_v22  ;;  %v131_v37 = vsel %vm99_vm8, 1, %v2160_v1  ;;  %vm165_vm9 = vcmp.eq.s32.totalorder %v2259_v26, %v2404_v23 }
  0x48   :  { %v424_v38 = vadd.s32 %v392_v20, %v326_v24  ;;  %vm263_vm10 = vcmp.eq.s32.totalorder %v2261_v27, %v2404_v23  ;;  %vm361_vm11 = vcmp.eq.s32.totalorder %v2263_v28, %v2404_v23  ;;  %v784_v41 = vsel %vm752_vm7, 1, %v2160_v1 }
  0x49   :  { %925 = vmatpush.msra.mxu0 %v882_v33  ;;  %2040 = vmatpush.msra.mxu2 %v882_v33  ;;  %v819_v40 = vadd.s32 %v787_v17, %v721_v34  ;;  %v197_v42 = vsel %vm165_vm9, 1, %v2160_v1  ;;  %v295_v43 = vsel %vm263_vm10, 1, %v2160_v1  ;;  %vm459_vm12 = vcmp.eq.s32.totalorder %v2265_v29, %v2404_v23 }
  0x4a   :  { %v522_v5 = vadd.s32 %v490_v18, %v424_v38  ;;  %v229_v44 = vadd.s32 %v197_v42, %v131_v37  ;;  %vm557_vm13 = vcmp.eq.s32.totalorder %v2267_v30, %v2404_v23  ;;  %v393_v46 = vsel %vm361_vm11, 1, %v2160_v1 }
  0x4b   :  { %v851_v45 = vcvt.s32.f32 %v819_v40  ;;  %v491_v47 = vsel %vm459_vm12, 1, %v2160_v1  ;;  %vm655_vm14 = vcmp.eq.s32.totalorder %v2273_v32, %v2404_v23  ;;  %v589_v50 = vsel %vm557_vm13, 1, %v2160_v1 }
  0x4c   :  { %v620_v48 = vadd.s32 %v588_v31, %v522_v5  ;;  %v327_v49 = vadd.s32 %v295_v43, %v229_v44  ;;  %v687_v51 = vsel %vm655_vm14, 1, %v2160_v1  ;;  %vm753_vm15 = vcmp.eq.s32.totalorder %v2289_v39, %v2404_v23 }
  0x4d   :  { %v883_v52 = vmul.f32 0.125, %v851_v45  ;;  %vm96_vm0 = vcmp.eq.s32.totalorder %v2215_v6, %v2420_v36  ;;  %vm162_vm1 = vcmp.eq.s32.totalorder %v2217_v7, %v2420_v36  ;;  %vm260_vm2 = vcmp.eq.s32.totalorder %v2219_v8, %v2420_v36 }
  0x4e   :  { %v718_v53 = vadd.s32 %v686_v35, %v620_v48  ;;  %v425_v54 = vadd.s32 %v393_v46, %v327_v49  ;;  %v128_v55 = vsel %vm96_vm0, 1, %v2160_v1  ;;  %v194_v56 = vsel %vm162_vm1, 1, %v2160_v1 }
  0x4f   :  { %1038 = vmatpush.msra.mxu1 %v883_v52  ;;  %v226_v57 = vadd.s32 %v194_v56, %v128_v55  ;;  %vm358_vm3 = vcmp.eq.s32.totalorder %v2221_v9, %v2420_v36  ;;  %vm456_vm4 = vcmp.eq.s32.totalorder %v2223_v10, %v2420_v36  ;;  %v292_v60 = vsel %vm260_vm2, 1, %v2160_v1  ;;  %2056 = vmatpush.msra.mxu3 %v883_v52 }
  0x50   :  { %v816_v58 = vadd.s32 %v784_v41, %v718_v53  ;;  %v523_v59 = vadd.s32 %v491_v47, %v425_v54  ;;  %v390_v61 = vsel %vm358_vm3, 1, %v2160_v1  ;;  %v785_v62 = vsel %vm753_vm15, 1, %v2160_v1 }
  0x51   :  { %v324_v63 = vadd.s32 %v292_v60, %v226_v57  ;;  %vm554_vm5 = vcmp.eq.s32.totalorder %v2225_v11, %v2420_v36  ;;  %vm652_vm6 = vcmp.eq.s32.totalorder %v2227_v12, %v2420_v36  ;;  %v488_v14 = vsel %vm456_vm4, 1, %v2160_v1 }
  0x52   :  { %v848_v3 = vcvt.s32.f32 %v816_v58  ;;  %v621_v4 = vadd.s32 %v589_v50, %v523_v59  ;;  %v586_v15 = vsel %vm554_vm5, 1, %v2160_v1  ;;  %v684_v17 = vsel %vm652_vm6, 1, %v2160_v1 }
  0x53   :  { %v422_v16 = vadd.s32 %v390_v61, %v324_v63  ;;  %vm97_vm7 = vcmp.eq.s32.totalorder %v2257_v25, %v2420_v36  ;;  %vm163_vm8 = vcmp.eq.s32.totalorder %v2259_v26, %v2420_v36  ;;  %vm750_vm9 = vcmp.eq.s32.totalorder %v2229_v13, %v2420_v36 }
  0x54   :  { %v880_v23 = vmul.f32 0.125, %v848_v3  ;;  %v719_v19 = vadd.s32 %v687_v51, %v621_v4  ;;  %v129_v20 = vsel %vm97_vm7, 1, %v2160_v1  ;;  %v195_v22 = vsel %vm163_vm8, 1, %v2160_v1 }
  0x55   :  { %v520_v21 = vadd.s32 %v488_v14, %v422_v16  ;;  %vm261_vm10 = vcmp.eq.s32.totalorder %v2261_v27, %v2420_v36  ;;  %vm359_vm11 = vcmp.eq.s32.totalorder %v2263_v28, %v2420_v36  ;;  %v227_v24 = vadd.s32 %v195_v22, %v129_v20 }
  0x56   :  { %926 = vmatpush.msra.mxu0 %v880_v23  ;;  %2041 = vmatpush.msra.mxu2 %v880_v23  ;;  %v817_v18 = vadd.s32 %v785_v62, %v719_v19  ;;  %v293_v31 = vsel %vm261_vm10, 1, %v2160_v1  ;;  %v391_v33 = vsel %vm359_vm11, 1, %v2160_v1  ;;  %vm457_vm12 = vcmp.eq.s32.totalorder %v2265_v29, %v2420_v36 }
  0x57   :  { %v618_v34 = vadd.s32 %v586_v15, %v520_v21  ;;  %vm555_vm13 = vcmp.eq.s32.totalorder %v2267_v30, %v2420_v36  ;;  %vm653_vm14 = vcmp.eq.s32.totalorder %v2273_v32, %v2420_v36  ;;  %v782_v37 = vsel %vm750_vm9, 1, %v2160_v1 }
  0x58   :  { %v849_v35 = vcvt.s32.f32 %v817_v18  ;;  %v325_v38 = vadd.s32 %v293_v31, %v227_v24  ;;  %v489_v40 = vsel %vm457_vm12, 1, %v2160_v1  ;;  %v587_v42 = vsel %vm555_vm13, 1, %v2160_v1 }
  0x59   :  { %v716_v41 = vadd.s32 %v684_v17, %v618_v34  ;;  %vm751_vm15 = vcmp.eq.s32.totalorder %v2289_v39, %v2420_v36  ;;  %v2561_v43 = vadd.s32 72, %v2206_v2  ;;  %v685_v45 = vsel %vm653_vm14, 1, %v2160_v1 }
  0x5a   :  { %v881_v5 = vmul.f32 0.125, %v849_v35  ;;  %v423_v44 = vadd.s32 %v391_v33, %v325_v38  ;;  %v783_v46 = vsel %vm751_vm15, 1, %v2160_v1  ;;  %v2582_v55 = vadd.s32 64, %v2206_v2 }
  0x5b   :  { %v814_v47 = vadd.s32 %v782_v37, %v716_v41  ;;  %vm94_vm0 = vcmp.eq.s32.totalorder %v2215_v6, %v2561_v43  ;;  %vm160_vm1 = vcmp.eq.s32.totalorder %v2217_v7, %v2561_v43  ;;  %vm258_vm2 = vcmp.eq.s32.totalorder %v2219_v8, %v2561_v43 }
  0x5c   :  { %1039 = vmatpush.msra.mxu1 %v881_v5  ;;  %v521_v36 = vadd.s32 %v489_v40, %v423_v44  ;;  %v126_v48 = vsel %vm94_vm0, 1, %v2160_v1  ;;  %v192_v49 = vsel %vm160_vm1, 1, %v2160_v1  ;;  %v290_v50 = vsel %vm258_vm2, 1, %v2160_v1  ;;  %2057 = vmatpush.msra.mxu3 %v881_v5 }
  0x5d   :  { %v846_v51 = vcvt.s32.f32 %v814_v47  ;;  %v224_v52 = vadd.s32 %v192_v49, %v126_v48  ;;  %vm356_vm3 = vcmp.eq.s32.totalorder %v2221_v9, %v2561_v43  ;;  %vm454_vm4 = vcmp.eq.s32.totalorder %v2223_v10, %v2561_v43 }
  0x5e   :  { %v619_v53 = vadd.s32 %v587_v42, %v521_v36  ;;  %v388_v54 = vsel %vm356_vm3, 1, %v2160_v1  ;;  %vm552_vm5 = vcmp.eq.s32.totalorder %v2225_v11, %v2561_v43  ;;  %v486_v58 = vsel %vm454_vm4, 1, %v2160_v1 }
  0x5f   :  { %v878_v56 = vmul.f32 0.125, %v846_v51  ;;  %v322_v57 = vadd.s32 %v290_v50, %v224_v52  ;;  %vm650_vm6 = vcmp.eq.s32.totalorder %v2227_v12, %v2561_v43  ;;  %v584_v60 = vsel %vm552_vm5, 1, %v2160_v1 }
  0x60   :  { %v717_v59 = vadd.s32 %v685_v45, %v619_v53  ;;  %v682_v61 = vsel %vm650_vm6, 1, %v2160_v1  ;;  %vm95_vm7 = vcmp.eq.s32.totalorder %v2257_v25, %v2561_v43  ;;  %vm748_vm8 = vcmp.eq.s32.totalorder %v2229_v13, %v2561_v43 }
  0x61   :  { %927 = vmatpush.msra.mxu0 %v878_v56  ;;  %2042 = vmatpush.msra.mxu2 %v878_v56  ;;  %v420_v62 = vadd.s32 %v388_v54, %v322_v57  ;;  %v127_v63 = vsel %vm95_vm7, 1, %v2160_v1  ;;  %vm161_vm9 = vcmp.eq.s32.totalorder %v2259_v26, %v2561_v43  ;;  %vm259_vm10 = vcmp.eq.s32.totalorder %v2261_v27, %v2561_v43 }
  0x62   :  { %v815_v3 = vadd.s32 %v783_v46, %v717_v59  ;;  %v193_v4 = vsel %vm161_vm9, 1, %v2160_v1  ;;  %vm357_vm11 = vcmp.eq.s32.totalorder %v2263_v28, %v2561_v43  ;;  %v291_v16 = vsel %vm259_vm10, 1, %v2160_v1 }
  0x63   :  { %v518_v14 = vadd.s32 %v486_v58, %v420_v62  ;;  %v225_v15 = vadd.s32 %v193_v4, %v127_v63  ;;  %v389_v17 = vsel %vm357_vm11, 1, %v2160_v1  ;;  %vm455_vm12 = vcmp.eq.s32.totalorder %v2265_v29, %v2561_v43 }
  0x64   :  { %v847_v23 = vcvt.s32.f32 %v815_v3  ;;  %vm553_vm13 = vcmp.eq.s32.totalorder %v2267_v30, %v2561_v43  ;;  %vm651_vm14 = vcmp.eq.s32.totalorder %v2273_v32, %v2561_v43  ;;  %v780_v20 = vsel %vm748_vm8, 1, %v2160_v1 }
  0x65   :  { %v616_v19 = vadd.s32 %v584_v60, %v518_v14  ;;  %v323_v21 = vadd.s32 %v291_v16, %v225_v15  ;;  %v487_v22 = vsel %vm455_vm12, 1, %v2160_v1  ;;  %v585_v24 = vsel %vm553_vm13, 1, %v2160_v1 }
  0x66   :  { %v879_v18 = vmul.f32 0.125, %v847_v23  ;;  %v683_v31 = vsel %vm651_vm14, 1, %v2160_v1  ;;  %vm92_vm15 = vcmp.eq.s32.totalorder %v2215_v6, %v2582_v55  ;;  %vm749_vm0 = vcmp.eq.s32.totalorder %v2289_v39, %v2561_v43 }
  0x67   :  { %v714_v33 = vadd.s32 %v682_v61, %v616_v19  ;;  %v421_v34 = vadd.s32 %v389_v17, %v323_v21  ;;  %v124_v35 = vsel %vm92_vm15, 1, %v2160_v1  ;;  %vm158_vm1 = vcmp.eq.s32.totalorder %v2217_v7, %v2582_v55 }
  0x68   :  { %1040 = vmatpush.msra.mxu1 %v879_v18  ;;  %vm256_vm2 = vcmp.eq.s32.totalorder %v2219_v8, %v2582_v55  ;;  %vm354_vm3 = vcmp.eq.s32.totalorder %v2221_v9, %v2582_v55  ;;  %vm452_vm4 = vcmp.eq.s32.totalorder %v2223_v10, %v2582_v55  ;;  %v190_v40 = vsel %vm158_vm1, 1, %v2160_v1  ;;  %2058 = vmatpush.msra.mxu3 %v879_v18 }
  0x69   :  { %v812_v37 = vadd.s32 %v780_v20, %v714_v33  ;;  %v519_v38 = vadd.s32 %v487_v22, %v421_v34  ;;  %v288_v41 = vsel %vm256_vm2, 1, %v2160_v1  ;;  %v781_v42 = vsel %vm749_vm0, 1, %v2160_v1 }
  0x6a   :  { %v222_v43 = vadd.s32 %v190_v40, %v124_v35  ;;  %v386_v5 = vsel %vm354_vm3, 1, %v2160_v1  ;;  %vm550_vm5 = vcmp.eq.s32.totalorder %v2225_v11, %v2582_v55  ;;  %v484_v46 = vsel %vm452_vm4, 1, %v2160_v1 }
  0x6b   :  { %v844_v44 = vcvt.s32.f32 %v812_v37  ;;  %v617_v45 = vadd.s32 %v585_v24, %v519_v38  ;;  %vm648_vm6 = vcmp.eq.s32.totalorder %v2227_v12, %v2582_v55  ;;  %v582_v36 = vsel %vm550_vm5, 1, %v2160_v1 }
  0x6c   :  { %v320_v47 = vadd.s32 %v288_v41, %v222_v43  ;;  %vm746_vm7 = vcmp.eq.s32.totalorder %v2229_v13, %v2582_v55  ;;  %vm93_vm8 = vcmp.eq.s32.totalorder %v2257_v25, %v2582_v55  ;;  %v680_v50 = vsel %vm648_vm6, 1, %v2160_v1 }
  0x6d   :  { %v876_v48 = vmul.f32 0.125, %v844_v44  ;;  %v715_v49 = vadd.s32 %v683_v31, %v617_v45  ;;  %v125_v51 = vsel %vm93_vm8, 1, %v2160_v1  ;;  %vm159_vm9 = vcmp.eq.s32.totalorder %v2259_v26, %v2582_v55 }
  0x6e   :  { %v418_v52 = vadd.s32 %v386_v5, %v320_v47  ;;  %vm257_vm10 = vcmp.eq.s32.totalorder %v2261_v27, %v2582_v55  ;;  %vm355_vm11 = vcmp.eq.s32.totalorder %v2263_v28, %v2582_v55  ;;  %v778_v54 = vsel %vm746_vm7, 1, %v2160_v1 }
  0x6f   :  { %928 = vmatpush.msra.mxu0 %v876_v48  ;;  %2043 = vmatpush.msra.mxu2 %v876_v48  ;;  %v813_v53 = vadd.s32 %v781_v42, %v715_v49  ;;  %v191_v56 = vsel %vm159_vm9, 1, %v2160_v1  ;;  %v289_v57 = vsel %vm257_vm10, 1, %v2160_v1  ;;  %vm453_vm12 = vcmp.eq.s32.totalorder %v2265_v29, %v2582_v55 }
  0x70   :  { %v516_v58 = vadd.s32 %v484_v46, %v418_v52  ;;  %v223_v59 = vadd.s32 %v191_v56, %v125_v51  ;;  %vm551_vm13 = vcmp.eq.s32.totalorder %v2267_v30, %v2582_v55  ;;  %v387_v61 = vsel %vm355_vm11, 1, %v2160_v1 }
  0x71   :  { %v845_v60 = vcvt.s32.f32 %v813_v53  ;;  %v485_v62 = vsel %vm453_vm12, 1, %v2160_v1  ;;  %vm649_vm14 = vcmp.eq.s32.totalorder %v2273_v32, %v2582_v55  ;;  %v583_v4 = vsel %vm551_vm13, 1, %v2160_v1 }
  0x72   :  { %v614_v63 = vadd.s32 %v582_v36, %v516_v58  ;;  %v321_v3 = vadd.s32 %v289_v57, %v223_v59  ;;  %vm747_vm15 = vcmp.eq.s32.totalorder %v2289_v39, %v2582_v55  ;;  %v681_v15 = vsel %vm649_vm14, 1, %v2160_v1 }
  0x73   :  { %v877_v14 = vmul.f32 0.125, %v845_v60  ;;  %v779_v16 = vsel %vm747_vm15, 1, %v2160_v1  ;;  %v2668_v17 = vadd.s32 56, %v2206_v2  ;;  %v2671_v20 = vadd.s32 48, %v2206_v2 }
  0x74   :  { %v712_v23 = vadd.s32 %v680_v50, %v614_v63  ;;  %v419_v19 = vadd.s32 %v387_v61, %v321_v3  ;;  %v2674_v21 = vadd.s32 40, %v2206_v2  ;;  %v2690_v34 = vadd.s32 32, %v2206_v2 }
  0x75   :  { %1041 = vmatpush.msra.mxu1 %v877_v14  ;;  %vm90_vm0 = vcmp.eq.s32.totalorder %v2215_v6, %v2668_v17  ;;  %vm156_vm1 = vcmp.eq.s32.totalorder %v2217_v7, %v2668_v17  ;;  %vm254_vm2 = vcmp.eq.s32.totalorder %v2219_v8, %v2668_v17  ;;  %vm352_vm3 = vcmp.eq.s32.totalorder %v2221_v9, %v2668_v17 }
  0x76   :  { %v810_v55 = vadd.s32 %v778_v54, %v712_v23  ;;  %v517_v22 = vadd.s32 %v485_v62, %v419_v19  ;;  %v122_v18 = vsel %vm90_vm0, 1, %v2160_v1  ;;  %v188_v24 = vsel %vm156_vm1, 1, %v2160_v1  ;;  %2059 = vmatpush.msra.mxu3 %v877_v14 }
  0x77   :  { %v220_v31 = vadd.s32 %v188_v24, %v122_v18  ;;  %v286_v33 = vsel %vm254_vm2, 1, %v2160_v1  ;;  %vm450_vm4 = vcmp.eq.s32.totalorder %v2223_v10, %v2668_v17  ;;  %v384_v38 = vsel %vm352_vm3, 1, %v2160_v1 }
  0x78   :  { %v842_v35 = vcvt.s32.f32 %v810_v55  ;;  %v615_v37 = vadd.s32 %v583_v4, %v517_v22  ;;  %vm548_vm5 = vcmp.eq.s32.totalorder %v2225_v11, %v2668_v17  ;;  %v482_v41 = vsel %vm450_vm4, 1, %v2160_v1 }
  0x79   :  { %v318_v40 = vadd.s32 %v286_v33, %v220_v31  ;;  %v580_v42 = vsel %vm548_vm5, 1, %v2160_v1  ;;  %vm646_vm6 = vcmp.eq.s32.totalorder %v2227_v12, %v2668_v17  ;;  %vm744_vm7 = vcmp.eq.s32.totalorder %v2229_v13, %v2668_v17 }
  0x7a   :  { %v874_v43 = vmul.f32 0.125, %v842_v35  ;;  %v713_v5 = vadd.s32 %v681_v15, %v615_v37  ;;  %v678_v44 = vsel %vm646_vm6, 1, %v2160_v1  ;;  %vm91_vm8 = vcmp.eq.s32.totalorder %v2257_v25, %v2668_v17 }
  0x7b   :  { %v416_v45 = vadd.s32 %v384_v38, %v318_v40  ;;  %vm157_vm9 = vcmp.eq.s32.totalorder %v2259_v26, %v2668_v17  ;;  %vm255_vm10 = vcmp.eq.s32.totalorder %v2261_v27, %v2668_v17  ;;  %v123_v47 = vsel %vm91_vm8, 1, %v2160_v1 }
  0x7c   :  { %929 = vmatpush.msra.mxu0 %v874_v43  ;;  %2044 = vmatpush.msra.mxu2 %v874_v43  ;;  %v811_v46 = vadd.s32 %v779_v16, %v713_v5  ;;  %v189_v36 = vsel %vm157_vm9, 1, %v2160_v1  ;;  %v287_v48 = vsel %vm255_vm10, 1, %v2160_v1  ;;  %vm353_vm11 = vcmp.eq.s32.totalorder %v2263_v28, %v2668_v17 }
  0x7d   :  { %v514_v49 = vadd.s32 %v482_v41, %v416_v45  ;;  %v221_v50 = vadd.s32 %v189_v36, %v123_v47  ;;  %vm451_vm12 = vcmp.eq.s32.totalorder %v2265_v29, %v2668_v17  ;;  %v776_v52 = vsel %vm744_vm7, 1, %v2160_v1 }
  0x7e   :  { %v843_v51 = vcvt.s32.f32 %v811_v46  ;;  %v385_v53 = vsel %vm353_vm11, 1, %v2160_v1  ;;  %vm549_vm13 = vcmp.eq.s32.totalorder %v2267_v30, %v2668_v17  ;;  %v483_v57 = vsel %vm451_vm12, 1, %v2160_v1 }
  0x7f   :  { %v612_v54 = vadd.s32 %v580_v42, %v514_v49  ;;  %v319_v56 = vadd.s32 %v287_v48, %v221_v50  ;;  %vm647_vm14 = vcmp.eq.s32.totalorder %v2273_v32, %v2668_v17  ;;  %v581_v59 = vsel %vm549_vm13, 1, %v2160_v1 }
  0x80   :  { %v875_v58 = vmul.f32 0.125, %v843_v51  ;;  %v679_v60 = vsel %vm647_vm14, 1, %v2160_v1  ;;  %vm88_vm15 = vcmp.eq.s32.totalorder %v2215_v6, %v2671_v20  ;;  %vm745_vm0 = vcmp.eq.s32.totalorder %v2289_v39, %v2668_v17 }
  0x81   :  { %v710_v61 = vadd.s32 %v678_v44, %v612_v54  ;;  %v417_v62 = vadd.s32 %v385_v53, %v319_v56  ;;  %v120_v63 = vsel %vm88_vm15, 1, %v2160_v1  ;;  %vm154_vm1 = vcmp.eq.s32.totalorder %v2217_v7, %v2671_v20 }
  0x82   :  { %1042 = vmatpush.msra.mxu1 %v875_v58  ;;  %vm252_vm2 = vcmp.eq.s32.totalorder %v2219_v8, %v2671_v20  ;;  %vm350_vm3 = vcmp.eq.s32.totalorder %v2221_v9, %v2671_v20  ;;  %vm448_vm4 = vcmp.eq.s32.totalorder %v2223_v10, %v2671_v20  ;;  %v186_v14 = vsel %vm154_vm1, 1, %v2160_v1  ;;  %2060 = vmatpush.msra.mxu3 %v875_v58 }
  0x83   :  { %v808_v3 = vadd.s32 %v776_v52, %v710_v61  ;;  %v515_v4 = vadd.s32 %v483_v57, %v417_v62  ;;  %v284_v15 = vsel %vm252_vm2, 1, %v2160_v1  ;;  %v777_v16 = vsel %vm745_vm0, 1, %v2160_v1 }
  0x84   :  { %v218_v17 = vadd.s32 %v186_v14, %v120_v63  ;;  %v382_v23 = vsel %vm350_vm3, 1, %v2160_v1  ;;  %vm546_vm5 = vcmp.eq.s32.totalorder %v2225_v11, %v2671_v20  ;;  %v480_v22 = vsel %vm448_vm4, 1, %v2160_v1 }
  0x85   :  { %v840_v19 = vcvt.s32.f32 %v808_v3  ;;  %v613_v55 = vadd.s32 %v581_v59, %v515_v4  ;;  %vm644_vm6 = vcmp.eq.s32.totalorder %v2227_v12, %v2671_v20  ;;  %v578_v24 = vsel %vm546_vm5, 1, %v2160_v1 }
  0x86   :  { %v316_v18 = vadd.s32 %v284_v15, %v218_v17  ;;  %vm742_vm7 = vcmp.eq.s32.totalorder %v2229_v13, %v2671_v20  ;;  %vm89_vm8 = vcmp.eq.s32.totalorder %v2257_v25, %v2671_v20  ;;  %v676_v35 = vsel %vm644_vm6, 1, %v2160_v1 }
  0x87   :  { %v872_v31 = vmul.f32 0.125, %v840_v19  ;;  %v711_v33 = vadd.s32 %v679_v60, %v613_v55  ;;  %v121_v37 = vsel %vm89_vm8, 1, %v2160_v1  ;;  %vm155_vm9 = vcmp.eq.s32.totalorder %v2259_v26, %v2671_v20 }
  0x88   :  { %v414_v38 = vadd.s32 %v382_v23, %v316_v18  ;;  %vm253_vm10 = vcmp.eq.s32.totalorder %v2261_v27, %v2671_v20  ;;  %vm351_vm11 = vcmp.eq.s32.totalorder %v2263_v28, %v2671_v20  ;;  %v774_v41 = vsel %vm742_vm7, 1, %v2160_v1 }
  0x89   :  { %930 = vmatpush.msra.mxu0 %v872_v31  ;;  %2045 = vmatpush.msra.mxu2 %v872_v31  ;;  %v809_v40 = vadd.s32 %v777_v16, %v711_v33  ;;  %v187_v42 = vsel %vm155_vm9, 1, %v2160_v1  ;;  %v285_v43 = vsel %vm253_vm10, 1, %v2160_v1  ;;  %vm449_vm12 = vcmp.eq.s32.totalorder %v2265_v29, %v2671_v20 }
  0x8a   :  { %v512_v5 = vadd.s32 %v480_v22, %v414_v38  ;;  %v219_v44 = vadd.s32 %v187_v42, %v121_v37  ;;  %vm547_vm13 = vcmp.eq.s32.totalorder %v2267_v30, %v2671_v20  ;;  %v383_v46 = vsel %vm351_vm11, 1, %v2160_v1 }
  0x8b   :  { %v841_v45 = vcvt.s32.f32 %v809_v40  ;;  %v481_v47 = vsel %vm449_vm12, 1, %v2160_v1  ;;  %vm645_vm14 = vcmp.eq.s32.totalorder %v2273_v32, %v2671_v20  ;;  %v579_v49 = vsel %vm547_vm13, 1, %v2160_v1 }
  0x8c   :  { %v610_v36 = vadd.s32 %v578_v24, %v512_v5  ;;  %v317_v48 = vadd.s32 %v285_v43, %v219_v44  ;;  %v677_v50 = vsel %vm645_vm14, 1, %v2160_v1  ;;  %vm743_vm15 = vcmp.eq.s32.totalorder %v2289_v39, %v2671_v20 }
  0x8d   :  { %v873_v51 = vmul.f32 0.125, %v841_v45  ;;  %vm86_vm0 = vcmp.eq.s32.totalorder %v2215_v6, %v2674_v21  ;;  %vm152_vm1 = vcmp.eq.s32.totalorder %v2217_v7, %v2674_v21  ;;  %vm250_vm2 = vcmp.eq.s32.totalorder %v2219_v8, %v2674_v21 }
  0x8e   :  { %v708_v52 = vadd.s32 %v676_v35, %v610_v36  ;;  %v415_v53 = vadd.s32 %v383_v46, %v317_v48  ;;  %v118_v54 = vsel %vm86_vm0, 1, %v2160_v1  ;;  %v184_v56 = vsel %vm152_vm1, 1, %v2160_v1 }
  0x8f   :  { %1043 = vmatpush.msra.mxu1 %v873_v51  ;;  %v216_v57 = vadd.s32 %v184_v56, %v118_v54  ;;  %vm348_vm3 = vcmp.eq.s32.totalorder %v2221_v9, %v2674_v21  ;;  %vm446_vm4 = vcmp.eq.s32.totalorder %v2223_v10, %v2674_v21  ;;  %v282_v60 = vsel %vm250_vm2, 1, %v2160_v1  ;;  %2061 = vmatpush.msra.mxu3 %v873_v51 }
  0x90   :  { %v806_v58 = vadd.s32 %v774_v41, %v708_v52  ;;  %v513_v59 = vadd.s32 %v481_v47, %v415_v53  ;;  %v380_v61 = vsel %vm348_vm3, 1, %v2160_v1  ;;  %v775_v62 = vsel %vm743_vm15, 1, %v2160_v1 }
  0x91   :  { %v314_v63 = vadd.s32 %v282_v60, %v216_v57  ;;  %vm544_vm5 = vcmp.eq.s32.totalorder %v2225_v11, %v2674_v21  ;;  %vm642_vm6 = vcmp.eq.s32.totalorder %v2227_v12, %v2674_v21  ;;  %v478_v14 = vsel %vm446_vm4, 1, %v2160_v1 }
  0x92   :  { %v838_v3 = vcvt.s32.f32 %v806_v58  ;;  %v611_v4 = vadd.s32 %v579_v49, %v513_v59  ;;  %v576_v15 = vsel %vm544_vm5, 1, %v2160_v1  ;;  %v674_v17 = vsel %vm642_vm6, 1, %v2160_v1 }
  0x93   :  { %v412_v16 = vadd.s32 %v380_v61, %v314_v63  ;;  %vm87_vm7 = vcmp.eq.s32.totalorder %v2257_v25, %v2674_v21  ;;  %vm153_vm8 = vcmp.eq.s32.totalorder %v2259_v26, %v2674_v21  ;;  %vm740_vm9 = vcmp.eq.s32.totalorder %v2229_v13, %v2674_v21 }
  0x94   :  { %v870_v20 = vmul.f32 0.125, %v838_v3  ;;  %v709_v23 = vadd.s32 %v677_v50, %v611_v4  ;;  %v119_v19 = vsel %vm87_vm7, 1, %v2160_v1  ;;  %v185_v22 = vsel %vm153_vm8, 1, %v2160_v1 }
  0x95   :  { %v510_v55 = vadd.s32 %v478_v14, %v412_v16  ;;  %vm251_vm10 = vcmp.eq.s32.totalorder %v2261_v27, %v2674_v21  ;;  %vm349_vm11 = vcmp.eq.s32.totalorder %v2263_v28, %v2674_v21  ;;  %v217_v24 = vadd.s32 %v185_v22, %v119_v19 }
  0x96   :  { %931 = vmatpush.msra.mxu0 %v870_v20  ;;  %2046 = vmatpush.msra.mxu2 %v870_v20  ;;  %v807_v18 = vadd.s32 %v775_v62, %v709_v23  ;;  %v283_v31 = vsel %vm251_vm10, 1, %v2160_v1  ;;  %v381_v33 = vsel %vm349_vm11, 1, %v2160_v1  ;;  %vm447_vm12 = vcmp.eq.s32.totalorder %v2265_v29, %v2674_v21 }
  0x97   :  { %v608_v35 = vadd.s32 %v576_v15, %v510_v55  ;;  %vm545_vm13 = vcmp.eq.s32.totalorder %v2267_v30, %v2674_v21  ;;  %vm643_vm14 = vcmp.eq.s32.totalorder %v2273_v32, %v2674_v21  ;;  %v772_v38 = vsel %vm740_vm9, 1, %v2160_v1 }
  0x98   :  { %v839_v37 = vcvt.s32.f32 %v807_v18  ;;  %v315_v40 = vadd.s32 %v283_v31, %v217_v24  ;;  %v479_v41 = vsel %vm447_vm12, 1, %v2160_v1  ;;  %v577_v43 = vsel %vm545_vm13, 1, %v2160_v1 }
  0x99   :  { %v706_v42 = vadd.s32 %v674_v17, %v608_v35  ;;  %vm741_vm15 = vcmp.eq.s32.totalorder %v2289_v39, %v2674_v21  ;;  %vm84_vm0 = vcmp.eq.s32.totalorder %v2215_v6, %v2690_v34  ;;  %v675_v45 = vsel %vm643_vm14, 1, %v2160_v1 }
  0x9a   :  { %v871_v5 = vmul.f32 0.125, %v839_v37  ;;  %v413_v44 = vadd.s32 %v381_v33, %v315_v40  ;;  %v116_v46 = vsel %vm84_vm0, 1, %v2160_v1  ;;  %vm150_vm1 = vcmp.eq.s32.totalorder %v2217_v7, %v2690_v34 }
  0x9b   :  { %v804_v47 = vadd.s32 %v772_v38, %v706_v42  ;;  %vm248_vm2 = vcmp.eq.s32.totalorder %v2219_v8, %v2690_v34  ;;  %vm346_vm3 = vcmp.eq.s32.totalorder %v2221_v9, %v2690_v34  ;;  %v773_v36 = vsel %vm741_vm15, 1, %v2160_v1 }
  0x9c   :  { %1044 = vmatpush.msra.mxu1 %v871_v5  ;;  %v511_v21 = vadd.s32 %v479_v41, %v413_v44  ;;  %v182_v48 = vsel %vm150_vm1, 1, %v2160_v1  ;;  %v280_v49 = vsel %vm248_vm2, 1, %v2160_v1  ;;  %2062 = vmatpush.msra.mxu3 %v871_v5  ;;  %vm444_vm4 = vcmp.eq.s32.totalorder %v2223_v10, %v2690_v34 }
  0x9d   :  { %v836_v50 = vcvt.s32.f32 %v804_v47  ;;  %v214_v51 = vadd.s32 %v182_v48, %v116_v46  ;;  %vm542_vm5 = vcmp.eq.s32.totalorder %v2225_v11, %v2690_v34  ;;  %v378_v53 = vsel %vm346_vm3, 1, %v2160_v1 }
  0x9e   :  { %v609_v52 = vadd.s32 %v577_v43, %v511_v21  ;;  %v476_v54 = vsel %vm444_vm4, 1, %v2160_v1  ;;  %vm640_vm6 = vcmp.eq.s32.totalorder %v2227_v12, %v2690_v34  ;;  %v574_v58 = vsel %vm542_vm5, 1, %v2160_v1 }
  0x9f   :  { %v868_v56 = vmul.f32 0.125, %v836_v50  ;;  %v312_v57 = vadd.s32 %v280_v49, %v214_v51  ;;  %v672_v59 = vsel %vm640_vm6, 1, %v2160_v1  ;;  %vm738_vm7 = vcmp.eq.s32.totalorder %v2229_v13, %v2690_v34 }
  0xa0   :  { %v707_v60 = vadd.s32 %v675_v45, %v609_v52  ;;  %vm85_vm8 = vcmp.eq.s32.totalorder %v2257_v25, %v2690_v34  ;;  %vm151_vm9 = vcmp.eq.s32.totalorder %v2259_v26, %v2690_v34  ;;  %vm249_vm10 = vcmp.eq.s32.totalorder %v2261_v27, %v2690_v34 }
  0xa1   :  { %932 = vmatpush.msra.mxu0 %v868_v56  ;;  %2047 = vmatpush.msra.mxu2 %v868_v56  ;;  %v410_v61 = vadd.s32 %v378_v53, %v312_v57  ;;  %v117_v62 = vsel %vm85_vm8, 1, %v2160_v1  ;;  %v183_v63 = vsel %vm151_vm9, 1, %v2160_v1  ;;  %v281_v14 = vsel %vm249_vm10, 1, %v2160_v1 }
  0xa2   :  { %v805_v3 = vadd.s32 %v773_v36, %v707_v60  ;;  %v215_v4 = vadd.s32 %v183_v63, %v117_v62  ;;  %vm347_vm11 = vcmp.eq.s32.totalorder %v2263_v28, %v2690_v34  ;;  %vm445_vm12 = vcmp.eq.s32.totalorder %v2265_v29, %v2690_v34 }
  0xa3   :  { %v508_v15 = vadd.s32 %v476_v54, %v410_v61  ;;  %v379_v16 = vsel %vm347_vm11, 1, %v2160_v1  ;;  %vm543_vm13 = vcmp.eq.s32.totalorder %v2267_v30, %v2690_v34  ;;  %v770_v20 = vsel %vm738_vm7, 1, %v2160_v1 }
  0xa4   :  { %v837_v17 = vcvt.s32.f32 %v805_v3  ;;  %v313_v23 = vadd.s32 %v281_v14, %v215_v4  ;;  %v477_v19 = vsel %vm445_vm12, 1, %v2160_v1  ;;  %v575_v22 = vsel %vm543_vm13, 1, %v2160_v1 }
  0xa5   :  { %v606_v55 = vadd.s32 %v574_v58, %v508_v15  ;;  %vm641_vm14 = vcmp.eq.s32.totalorder %v2273_v32, %v2690_v34  ;;  %v2880_v18 = vadd.s32 24, %v2206_v2  ;;  %vm739_vm15 = vcmp.eq.s32.totalorder %v2289_v39, %v2690_v34 }
  0xa6   :  { %v869_v24 = vmul.f32 0.125, %v837_v17  ;;  %v411_v31 = vadd.s32 %v379_v16, %v313_v23  ;;  %v673_v33 = vsel %vm641_vm14, 1, %v2160_v1  ;;  %v771_v46 = vsel %vm739_vm15, 1, %v2160_v1 }
  0xa7   :  { %v704_v35 = vadd.s32 %v672_v59, %v606_v55  ;;  %vm82_vm0 = vcmp.eq.s32.totalorder %v2215_v6, %v2880_v18  ;;  %vm148_vm1 = vcmp.eq.s32.totalorder %v2217_v7, %v2880_v18  ;;  %vm246_vm2 = vcmp.eq.s32.totalorder %v2219_v8, %v2880_v18 }
  0xa8   :  { %1045 = vmatpush.msra.mxu1 %v869_v24  ;;  %v509_v37 = vadd.s32 %v477_v19, %v411_v31  ;;  %v114_v38 = vsel %vm82_vm0, 1, %v2160_v1  ;;  %v180_v40 = vsel %vm148_vm1, 1, %v2160_v1  ;;  %v278_v41 = vsel %vm246_vm2, 1, %v2160_v1  ;;  %2063 = vmatpush.msra.mxu3 %v869_v24 }
  0xa9   :  { %v802_v42 = vadd.s32 %v770_v20, %v704_v35  ;;  %v212_v43 = vadd.s32 %v180_v40, %v114_v38  ;;  %vm344_vm3 = vcmp.eq.s32.totalorder %v2221_v9, %v2880_v18  ;;  %vm442_vm4 = vcmp.eq.s32.totalorder %v2223_v10, %v2880_v18 }
  0xaa   :  { %v607_v5 = vadd.s32 %v575_v22, %v509_v37  ;;  %v376_v44 = vsel %vm344_vm3, 1, %v2160_v1  ;;  %vm540_vm5 = vcmp.eq.s32.totalorder %v2225_v11, %v2880_v18  ;;  %v474_v36 = vsel %vm442_vm4, 1, %v2160_v1 }
  0xab   :  { %v834_v45 = vcvt.s32.f32 %v802_v42  ;;  %v310_v47 = vadd.s32 %v278_v41, %v212_v43  ;;  %v572_v48 = vsel %vm540_vm5, 1, %v2160_v1  ;;  %vm83_vm6 = vcmp.eq.s32.totalorder %v2257_v25, %v2880_v18 }
  0xac   :  { %v705_v21 = vadd.s32 %v673_v33, %v607_v5  ;;  %vm638_vm7 = vcmp.eq.s32.totalorder %v2227_v12, %v2880_v18  ;;  %v115_v51 = vsel %vm83_vm6, 1, %v2160_v1  ;;  %vm149_vm8 = vcmp.eq.s32.totalorder %v2259_v26, %v2880_v18 }
  0xad   :  { %v866_v49 = vmul.f32 0.125, %v834_v45  ;;  %v408_v50 = vadd.s32 %v376_v44, %v310_v47  ;;  %vm247_vm9 = vcmp.eq.s32.totalorder %v2261_v27, %v2880_v18  ;;  %vm345_vm10 = vcmp.eq.s32.totalorder %v2263_v28, %v2880_v18 }
  0xae   :  { %v803_v52 = vadd.s32 %v771_v46, %v705_v21  ;;  %vm736_vm11 = vcmp.eq.s32.totalorder %v2229_v13, %v2880_v18  ;;  %v181_v53 = vsel %vm149_vm8, 1, %v2160_v1  ;;  %v279_v54 = vsel %vm247_vm9, 1, %v2160_v1 }
  0xaf   :  { %933 = vmatpush.msra.mxu0 %v866_v49  ;;  %2048 = vmatpush.msra.mxu2 %v866_v49  ;;  %v506_v34 = vadd.s32 %v474_v36, %v408_v50  ;;  %v670_v57 = vsel %vm638_vm7, 1, %v2160_v1  ;;  %v213_v58 = vadd.s32 %v181_v53, %v115_v51  ;;  %vm443_vm12 = vcmp.eq.s32.totalorder %v2265_v29, %v2880_v18 }
  0xb0   :  { %v835_v56 = vcvt.s32.f32 %v803_v52  ;;  %v377_v60 = vsel %vm345_vm10, 1, %v2160_v1  ;;  %vm541_vm13 = vcmp.eq.s32.totalorder %v2267_v30, %v2880_v18  ;;  %vm639_vm14 = vcmp.eq.s32.totalorder %v2273_v32, %v2880_v18 }
  0xb1   :  { %v604_v59 = vadd.s32 %v572_v48, %v506_v34  ;;  %v768_v62 = vsel %vm736_vm11, 1, %v2160_v1  ;;  %v311_v63 = vadd.s32 %v279_v54, %v213_v58  ;;  %v475_v4 = vsel %vm443_vm12, 1, %v2160_v1 }
  0xb2   :  { %v867_v61 = vmul.f32 0.125, %v835_v56  ;;  %v2933_v14 = vadd.s32 16, %v2206_v2  ;;  %v573_v16 = vsel %vm541_vm13, 1, %v2160_v1  ;;  %v671_v17 = vsel %vm639_vm14, 1, %v2160_v1 }
  0xb3   :  { %v702_v3 = vadd.s32 %v670_v57, %v604_v59  ;;  %v409_v15 = vadd.s32 %v377_v60, %v311_v63  ;;  %vm737_vm15 = vcmp.eq.s32.totalorder %v2289_v39, %v2880_v18  ;;  %v2958_v41 = vadd.s32 8, %v2206_v2 }
  0xb4   :  { %1046 = vmatpush.msra.mxu1 %v867_v61  ;;  %vm80_vm0 = vcmp.eq.s32.totalorder %v2215_v6, %v2933_v14  ;;  %vm146_vm1 = vcmp.eq.s32.totalorder %v2217_v7, %v2933_v14  ;;  %vm244_vm2 = vcmp.eq.s32.totalorder %v2219_v8, %v2933_v14  ;;  %2064 = vmatpush.msra.mxu3 %v867_v61  ;;  %v769_v33 = vsel %vm737_vm15, 1, %v2160_v1 }
  0xb5   :  { %v800_v20 = vadd.s32 %v768_v62, %v702_v3  ;;  %v507_v23 = vadd.s32 %v475_v4, %v409_v15  ;;  %v112_v19 = vsel %vm80_vm0, 1, %v2160_v1  ;;  %v178_v55 = vsel %vm146_vm1, 1, %v2160_v1 }
  0xb6   :  { %v276_v22 = vsel %vm244_vm2, 1, %v2160_v1  ;;  %v210_v18 = vadd.s32 %v178_v55, %v112_v19  ;;  %vm342_vm3 = vcmp.eq.s32.totalorder %v2221_v9, %v2933_v14  ;;  %vm440_vm4 = vcmp.eq.s32.totalorder %v2223_v10, %v2933_v14 }
  0xb7   :  { %v832_v24 = vcvt.s32.f32 %v800_v20  ;;  %v605_v31 = vadd.s32 %v573_v16, %v507_v23  ;;  %v374_v35 = vsel %vm342_vm3, 1, %v2160_v1  ;;  %vm538_vm5 = vcmp.eq.s32.totalorder %v2225_v11, %v2933_v14 }
  0xb8   :  { %v308_v38 = vadd.s32 %v276_v22, %v210_v18  ;;  %v472_v40 = vsel %vm440_vm4, 1, %v2160_v1  ;;  %v570_v43 = vsel %vm538_vm5, 1, %v2160_v1  ;;  %vm636_vm6 = vcmp.eq.s32.totalorder %v2227_v12, %v2933_v14 }
  0xb9   :  { %v864_v37 = vmul.f32 0.125, %v832_v24  ;;  %v703_v42 = vadd.s32 %v671_v17, %v605_v31  ;;  %vm81_vm7 = vcmp.eq.s32.totalorder %v2257_v25, %v2933_v14  ;;  %vm734_vm8 = vcmp.eq.s32.totalorder %v2229_v13, %v2933_v14 }
  0xba   :  { %v406_v5 = vadd.s32 %v374_v35, %v308_v38  ;;  %v113_v44 = vsel %vm81_vm7, 1, %v2160_v1  ;;  %vm147_vm9 = vcmp.eq.s32.totalorder %v2259_v26, %v2933_v14  ;;  %vm245_vm10 = vcmp.eq.s32.totalorder %v2261_v27, %v2933_v14 }
  0xbb   :  { %934 = vmatpush.msra.mxu0 %v864_v37  ;;  %2049 = vmatpush.msra.mxu2 %v864_v37  ;;  %v801_v45 = vadd.s32 %v769_v33, %v703_v42  ;;  %v179_v46 = vsel %vm147_vm9, 1, %v2160_v1  ;;  %vm343_vm11 = vcmp.eq.s32.totalorder %v2263_v28, %v2933_v14  ;;  %v668_v21 = vsel %vm636_vm6, 1, %v2160_v1 }
  0xbc   :  { %v504_v47 = vadd.s32 %v472_v40, %v406_v5  ;;  %v211_v36 = vadd.s32 %v179_v46, %v113_v44  ;;  %v277_v48 = vsel %vm245_vm10, 1, %v2160_v1  ;;  %v375_v50 = vsel %vm343_vm11, 1, %v2160_v1 }
  0xbd   :  { %v833_v49 = vcvt.s32.f32 %v801_v45  ;;  %vm441_vm12 = vcmp.eq.s32.totalorder %v2265_v29, %v2933_v14  ;;  %vm539_vm13 = vcmp.eq.s32.totalorder %v2267_v30, %v2933_v14  ;;  %v766_v52 = vsel %vm734_vm8, 1, %v2160_v1 }
  0xbe   :  { %v602_v51 = vadd.s32 %v570_v43, %v504_v47  ;;  %v309_v34 = vadd.s32 %v277_v48, %v211_v36  ;;  %vm637_vm14 = vcmp.eq.s32.totalorder %v2273_v32, %v2933_v14  ;;  %v473_v54 = vsel %vm441_vm12, 1, %v2160_v1 }
  0xbf   :  { %v865_v53 = vmul.f32 0.125, %v833_v49  ;;  %v571_v56 = vsel %vm539_vm13, 1, %v2160_v1  ;;  %vm78_vm15 = vcmp.eq.s32.totalorder %v2215_v6, %v2958_v41  ;;  %vm735_vm0 = vcmp.eq.s32.totalorder %v2289_v39, %v2933_v14 }
  0xc0   :  { %v700_v57 = vadd.s32 %v668_v21, %v602_v51  ;;  %v407_v58 = vadd.s32 %v375_v50, %v309_v34  ;;  %v110_v59 = vsel %vm78_vm15, 1, %v2160_v1  ;;  %vm144_vm1 = vcmp.eq.s32.totalorder %v2217_v7, %v2958_v41 }
  0xc1   :  { %1047 = vmatpush.msra.mxu1 %v865_v53  ;;  %vm242_vm2 = vcmp.eq.s32.totalorder %v2219_v8, %v2958_v41  ;;  %vm340_vm3 = vcmp.eq.s32.totalorder %v2221_v9, %v2958_v41  ;;  %vm438_vm4 = vcmp.eq.s32.totalorder %v2223_v10, %v2958_v41  ;;  %vm76_vm5 = vcmp.eq.s32.totalorder %v2215_v6, %v2206_v2 }
  0xc2   :  { %vm142_vm6 = vcmp.eq.s32.totalorder %v2217_v7, %v2206_v2  ;;  %v798_v60 = vadd.s32 %v766_v52, %v700_v57  ;;  %v505_v61 = vadd.s32 %v473_v54, %v407_v58  ;;  %v176_v62 = vsel %vm144_vm1, 1, %v2160_v1  ;;  %2065 = vmatpush.msra.mxu3 %v865_v53 }
  0xc3   :  { %v274_v63 = vsel %vm242_vm2, 1, %v2160_v1  ;;  %vm240_vm7 = vcmp.eq.s32.totalorder %v2219_v8, %v2206_v2  ;;  %v669_v3 = vsel %vm637_vm14, 1, %v2160_v1  ;;  %v767_v4 = vsel %vm735_vm0, 1, %v2160_v1 }
  0xc4   :  { %v208_v15 = vadd.s32 %v176_v62, %v110_v59  ;;  %vm536_vm8 = vcmp.eq.s32.totalorder %v2225_v11, %v2958_v41  ;;  %v830_v16 = vcvt.s32.f32 %v798_v60  ;;  %v603_v17 = vadd.s32 %v571_v56, %v505_v61 }
  0xc5   :  { %v372_v20 = vsel %vm340_vm3, 1, %v2160_v1  ;;  %v470_v23 = vsel %vm438_vm4, 1, %v2160_v1  ;;  %v568_v14 = vsel %vm536_vm8, 1, %v2160_v1  ;;  %vm634_vm9 = vcmp.eq.s32.totalorder %v2227_v12, %v2958_v41 }
  0xc6   :  { %v306_v19 = vadd.s32 %v274_v63, %v208_v15  ;;  %vm79_vm10 = vcmp.eq.s32.totalorder %v2257_v25, %v2958_v41  ;;  %v862_v55 = vmul.f32 0.125, %v830_v16  ;;  %v701_v22 = vadd.s32 %v669_v3, %v603_v17 }
  0xc7   :  { %vm732_vm11 = vcmp.eq.s32.totalorder %v2229_v13, %v2958_v41  ;;  %v111_v24 = vsel %vm79_vm10, 1, %v2160_v1  ;;  %vm145_vm12 = vcmp.eq.s32.totalorder %v2259_v26, %v2958_v41  ;;  %vm243_vm13 = vcmp.eq.s32.totalorder %v2261_v27, %v2958_v41 }
  0xc8   :  { %v404_v18 = vadd.s32 %v372_v20, %v306_v19  ;;  %vm341_vm14 = vcmp.eq.s32.totalorder %v2263_v28, %v2958_v41  ;;  %935 = vmatpush.msra.mxu0 %v862_v55  ;;  %2050 = vmatpush.msra.mxu2 %v862_v55  ;;  %v799_v31 = vadd.s32 %v767_v4, %v701_v22  ;;  %v666_v33 = vsel %vm634_vm9, 1, %v2160_v1  ;;  %v890_v22 = vld [vmem:[%s3764_s1] sm:$0xff] }
  0xc9   :  { %v177_v35 = vsel %vm145_vm12, 1, %v2160_v1  ;;  %v275_v37 = vsel %vm243_vm13, 1, %v2160_v1  ;;  %vm439_vm15 = vcmp.eq.s32.totalorder %v2265_v29, %v2958_v41  ;;  %vm537_vm0 = vcmp.eq.s32.totalorder %v2267_v30, %v2958_v41 }
  0xca   :  { %v502_v38 = vadd.s32 %v470_v23, %v404_v18  ;;  %v209_v40 = vadd.s32 %v177_v35, %v111_v24  ;;  %v831_v42 = vcvt.s32.f32 %v799_v31  ;;  %v764_v43 = vsel %vm732_vm11, 1, %v2160_v1  ;;  %v910_v35 = vld [vmem:[%s3764_s1 + $0xa0] sm:$0xff] }
  0xcb   :  { %v373_v5 = vsel %vm341_vm14, 1, %v2160_v1  ;;  %v471_v44 = vsel %vm439_vm15, 1, %v2160_v1  ;;  %v569_v47 = vsel %vm537_vm0, 1, %v2160_v1  ;;  %vm635_vm1 = vcmp.eq.s32.totalorder %v2273_v32, %v2958_v41 }
  0xcc   :  { %v600_v45 = vadd.s32 %v568_v14, %v502_v38  ;;  %v307_v46 = vadd.s32 %v275_v37, %v209_v40  ;;  %v863_v21 = vmul.f32 0.125, %v831_v42  ;;  %vm733_vm2 = vcmp.eq.s32.totalorder %v2289_v39, %v2958_v41  ;;  %v911_v37 = vld [vmem:[%s3764_s1 + $0xa8] sm:$0xff]  ;;  %v893_v38 = vld [vmem:[%s3764_s1 + $0x18] sm:$0xff]  ;;  %v912_v40 = vld [vmem:[%s3764_s1 + $0xb0] sm:$0xff] }
  0xcd   :  { %v108_v36 = vsel %vm76_vm5, 1, %v2160_v1  ;;  %v174_v48 = vsel %vm142_vm6, 1, %v2160_v1  ;;  %v272_v52 = vsel %vm240_vm7, 1, %v2160_v1  ;;  %v667_v34 = vsel %vm635_vm1, 1, %v2160_v1  ;;  %v894_v42 = vld [vmem:[%s3764_s1 + $0x20] sm:$0xff] }
  0xce   :  { %v698_v49 = vadd.s32 %v666_v33, %v600_v45  ;;  %v405_v50 = vadd.s32 %v373_v5, %v307_v46  ;;  %v206_v51 = vadd.s32 %v174_v48, %v108_v36  ;;  %1048 = vmatpush.msra.mxu1 %v863_v21  ;;  %vm338_vm3 = vcmp.eq.s32.totalorder %v2221_v9, %v2206_v2  ;;  %v891_v33 = vld [vmem:[%s3764_s1 + $0x8] sm:$0xff]  ;;  %v896_v45 = vld [vmem:[%s3764_s1 + $0x30] sm:$0xff]  ;;  %v898_v36 = vld [vmem:[%s3764_s1 + $0x40] sm:$0xff] }
  0xcf   :  { %vm436_vm4 = vcmp.eq.s32.totalorder %v2223_v10, %v2206_v2  ;;  %vm534_vm5 = vcmp.eq.s32.totalorder %v2225_v11, %v2206_v2  ;;  %v370_v54 = vsel %vm338_vm3, 1, %v2160_v1  ;;  %2066 = vmatpush.msra.mxu3 %v863_v21  ;;  %v765_v8 = vsel %vm733_vm2, 1, %v2160_v1  ;;  %v895_v5 = vld [vmem:[%s3764_s1 + $0x28] sm:$0xff]  ;;  %v916_v21 = vld [vmem:[%s3764_s1 + $0xd0] sm:$0xff]  ;;  %v917_v48 = vld [vmem:[%s3764_s1 + $0xd8] sm:$0xff] }
  0xd0   :  { %v796_v6 = vadd.s32 %v764_v43, %v698_v49  ;;  %v503_v7 = vadd.s32 %v471_v44, %v405_v50  ;;  %v304_v53 = vadd.s32 %v272_v52, %v206_v51  ;;  %v468_v56 = vsel %vm436_vm4, 1, %v2160_v1  ;;  %v913_v43 = vld [vmem:[%s3764_s1 + $0xb8] sm:$0xff]  ;;  %v914_v44 = vld [vmem:[%s3764_s1 + $0xc0] sm:$0xff]  ;;  %v915_v46 = vld [vmem:[%s3764_s1 + $0xc8] sm:$0xff] }
  0xd1   :  { %v566_v9 = vsel %vm534_vm5, 1, %v2160_v1  ;;  %vm632_vm6 = vcmp.eq.s32.totalorder %v2227_v12, %v2206_v2  ;;  %vm730_vm7 = vcmp.eq.s32.totalorder %v2229_v13, %v2206_v2  ;;  %vm77_vm8 = vcmp.eq.s32.totalorder %v2257_v25, %v2206_v2  ;;  %v899_v49 = vld [vmem:[%s3764_s1 + $0x48] sm:$0xff]  ;;  %v918_v50 = vld [vmem:[%s3764_s1 + $0xe0] sm:$0xff]  ;;  %v900_v51 = vld [vmem:[%s3764_s1 + $0x50] sm:$0xff] }
  0xd2   :  { %v828_v10 = vcvt.s32.f32 %v796_v6  ;;  %v601_v11 = vadd.s32 %v569_v47, %v503_v7  ;;  %v402_v57 = vadd.s32 %v370_v54, %v304_v53  ;;  %vm143_vm9 = vcmp.eq.s32.totalorder %v2259_v26, %v2206_v2  ;;  %v897_v47 = vld [vmem:[%s3764_s1 + $0x38] sm:$0xff]  ;;  %v919_v52 = vld [vmem:[%s3764_s1 + $0xe8] sm:$0xff]  ;;  %v920_v6 = vld [vmem:[%s3764_s1 + $0xf0] sm:$0xff] }
  0xd3   :  { %vm241_vm10 = vcmp.eq.s32.totalorder %v2261_v27, %v2206_v2  ;;  %vm339_vm11 = vcmp.eq.s32.totalorder %v2263_v28, %v2206_v2  ;;  %v109_v59 = vsel %vm77_vm8, 1, %v2160_v1  ;;  %v664_v60 = vsel %vm632_vm6, 1, %v2160_v1  ;;  %v902_v7 = vld [vmem:[%s3764_s1 + $0x60] sm:$0xff]  ;;  %v921_v53 = vld [vmem:[%s3764_s1 + $0xf8] sm:$0xff]  ;;  %v903_v54 = vld [vmem:[%s3764_s1 + $0x68] sm:$0xff] }
  0xd4   :  { %v860_v41 = vmul.f32 0.125, %v828_v10  ;;  %v699_v12 = vadd.s32 %v667_v34, %v601_v11  ;;  %v500_v58 = vadd.s32 %v468_v56, %v402_v57  ;;  %v175_v61 = vsel %vm143_vm9, 1, %v2160_v1  ;;  %v901_v34 = vld [vmem:[%s3764_s1 + $0x58] sm:$0xff]  ;;  %v906_v10 = vld [vmem:[%s3764_s1 + $0x80] sm:$0xff] }
  0xd5   :  { %v273_v25 = vsel %vm241_vm10, 1, %v2160_v1  ;;  %vm437_vm12 = vcmp.eq.s32.totalorder %v2265_v29, %v2206_v2  ;;  %v207_v62 = vadd.s32 %v175_v61, %v109_v59  ;;  %v762_v28 = vsel %vm730_vm7, 1, %v2160_v1  ;;  %v905_v56 = vld [vmem:[%s3764_s1 + $0x78] sm:$0xff] }
  0xd6   :  { %936 = vmatpush.msra.mxu0 %v860_v41  ;;  %2051 = vmatpush.msra.mxu2 %v860_v41  ;;  %v797_v26 = vadd.s32 %v765_v8, %v699_v12  ;;  %v598_v27 = vadd.s32 %v566_v9, %v500_v58  ;;  %v371_v63 = vsel %vm339_vm11, 1, %v2160_v1  ;;  %vm535_vm13 = vcmp.eq.s32.totalorder %v2267_v30, %v2206_v2  ;;  %v904_v8 = vld [vmem:[%s3764_s1 + $0x70] sm:$0xff]  ;;  %v907_v12 = vld [vmem:[%s3764_s1 + $0x88] sm:$0xff] }
  0xd7   :  { %v305_v15 = vadd.s32 %v273_v25, %v207_v62  ;;  %v469_v29 = vsel %vm437_vm12, 1, %v2160_v1  ;;  %vm633_vm14 = vcmp.eq.s32.totalorder %v2273_v32, %v2206_v2  ;;  %v567_v23 = vsel %vm535_vm13, 1, %v2160_v1  ;;  %v909_v32 = vld [vmem:[%s3764_s1 + $0x98] sm:$0xff]  ;;  %v908_v25 = vld [vmem:[%s3764_s1 + $0x90] sm:$0xff] }
  0xd8   :  { %v829_v3 = vcvt.s32.f32 %v797_v26  ;;  %v696_v4 = vadd.s32 %v664_v60, %v598_v27  ;;  %vm731_vm15 = vcmp.eq.s32.totalorder %v2289_v39, %v2206_v2  ;;  %v665_v14 = vsel %vm633_vm14, 1, %v2160_v1 }
  0xd9   :  { %v403_v20 = vadd.s32 %v371_v63, %v305_v15  ;;  %v763_v24 = vsel %vm731_vm15, 1, %v2160_v1  ;;  %v892_v1 = vld [vmem:[%s3764_s1 + $0x10] sm:$0xff]  ;;  %vm2011_vm0 = vcmask 1040384  }
  0xda   :  { %v861_v16 = vmul.f32 0.125, %v829_v3  ;;  %v794_v17 = vadd.s32 %v762_v28, %v696_v4 }
  0xdb   :  { %v501_v19 = vadd.s32 %v469_v29, %v403_v20 }
  0xdc   :  { %1049 = vmatpush.msra.mxu1 %v861_v16  ;;  %v826_v13 = vcvt.s32.f32 %v794_v17  ;;  %2067 = vmatpush.msra.mxu3 %v861_v16 }
  0xdd   :  { %v599_v55 = vadd.s32 %v567_v23, %v501_v19 }
  0xde   :  { %v858_v30 = vmul.f32 0.125, %v826_v13 }
  0xdf   :  { %v697_v18 = vadd.s32 %v665_v14, %v599_v55 }
  0xe0   :  { %937 = vmatpush.msra.mxu0 %v858_v30  ;;  %2052 = vmatpush.msra.mxu2 %v858_v30 }
  0xe1   :  { %938 = vmatmul.f32.vlgmr.msra.gmra.mxu0 %v890_v22  ;;  %995 = vmatmul.f32.vlgmr.msra.gmra.mxu2 %v909_v32  ;;  %v795_v2 = vadd.s32 %v763_v24, %v697_v18 }
  0xe3   :  { %v827_v39 = vcvt.s32.f32 %v795_v2 }
  0xe5   :  { %v859_v31 = vmul.f32 0.125, %v827_v39 }
  0xe7   :  { %1050 = vmatpush.msra.mxu1 %v859_v31  ;;  %2068 = vmatpush.msra.mxu3 %v859_v31 }
  0xe8   :  { %1051 = vmatmul.f32.vlgmr.msra.gmra.mxu1 %v890_v22  ;;  %1108 = vmatmul.f32.vlgmr.msra.gmra.mxu3 %v909_v32 }
  0xe9   :  { %941 = vmatmul.f32.gmra.mxu0 %v891_v33  ;;  %998 = vmatmul.f32.gmra.mxu2 %v910_v35 }
  0xf0   :  { %1054 = vmatmul.f32.gmra.mxu1 %v891_v33  ;;  %1111 = vmatmul.f32.gmra.mxu3 %v910_v35 }
  0xf1   :  { %944 = vmatmul.f32.gmra.mxu0 %v892_v1  ;;  %1001 = vmatmul.f32.gmra.mxu2 %v911_v37 }
  0xf8   :  { %1057 = vmatmul.f32.gmra.mxu1 %v892_v1  ;;  %1114 = vmatmul.f32.gmra.mxu3 %v911_v37 }
  0xf9   :  { %947 = vmatmul.f32.gmra.mxu0 %v893_v38  ;;  %1004 = vmatmul.f32.gmra.mxu2 %v912_v40 }
 0x100   :  { %1060 = vmatmul.f32.gmra.mxu1 %v893_v38  ;;  %1117 = vmatmul.f32.gmra.mxu3 %v912_v40 }
 0x101   :  { %950 = vmatmul.f32.gmra.mxu0 %v894_v42  ;;  %1007 = vmatmul.f32.gmra.mxu2 %v913_v43 }
 0x108   :  { %1063 = vmatmul.f32.gmra.mxu1 %v894_v42  ;;  %1120 = vmatmul.f32.gmra.mxu3 %v913_v43  ;;  %v1227_v43 = vld [vmem:[%s3766_s3 + $0x78] sm:$0xff] }
 0x109   :  { %953 = vmatmul.f32.gmra.mxu0 %v895_v5  ;;  %1010 = vmatmul.f32.gmra.mxu2 %v914_v44 }
 0x10a   :  { %1321 = vperm.xlu0 %2075, %v1227_v43  }
 0x110   :  { %1066 = vmatmul.f32.gmra.mxu1 %v895_v5  ;;  %1123 = vmatmul.f32.gmra.mxu3 %v914_v44 }
 0x111   :  { %956 = vmatmul.f32.gmra.mxu0 %v896_v45  ;;  %1013 = vmatmul.f32.gmra.mxu2 %v915_v46 }
 0x118   :  { %1069 = vmatmul.f32.gmra.mxu1 %v896_v45  ;;  %1126 = vmatmul.f32.gmra.mxu3 %v915_v46 }
 0x119   :  { %959 = vmatmul.f32.gmra.mxu0 %v897_v47  ;;  %1016 = vmatmul.f32.gmra.mxu2 %v916_v21 }
 0x120   :  { %1072 = vmatmul.f32.gmra.mxu1 %v897_v47  ;;  %1129 = vmatmul.f32.gmra.mxu3 %v916_v21  ;;  %v1226_v47 = vld [vmem:[%s3766_s3 + $0x70] sm:$0xff] }
 0x121   :  { %962 = vmatmul.f32.gmra.mxu0 %v898_v36  ;;  %1019 = vmatmul.f32.gmra.mxu2 %v917_v48 }
 0x122   :  { %1316 = vperm.xlu0 %2075, %v1226_v47  }
 0x128   :  { %1075 = vmatmul.f32.gmra.mxu1 %v898_v36  ;;  %1132 = vmatmul.f32.gmra.mxu3 %v917_v48 }
 0x129   :  { %965 = vmatmul.f32.gmra.mxu0 %v899_v49  ;;  %1022 = vmatmul.f32.gmra.mxu2 %v918_v50 }
 0x130   :  { %1078 = vmatmul.f32.gmra.mxu1 %v899_v49  ;;  %1135 = vmatmul.f32.gmra.mxu3 %v918_v50  ;;  %v1243_v50 = vld [vmem:[%s3766_s3 + $0xf8] sm:$0xff] }
 0x131   :  { %968 = vmatmul.f32.gmra.mxu0 %v900_v51  ;;  %1025 = vmatmul.f32.gmra.mxu2 %v919_v52 }
 0x132   :  { %1401 = vperm.xlu1 %2076, %v1243_v50  }
 0x138   :  { %1081 = vmatmul.f32.gmra.mxu1 %v900_v51  ;;  %1138 = vmatmul.f32.gmra.mxu3 %v919_v52  ;;  %v1242_v51 = vld [vmem:[%s3766_s3 + $0xf0] sm:$0xff]  ;;  %v1241_v52 = vld [vmem:[%s3766_s3 + $0xe8] sm:$0xff] }
 0x139   :  { %971 = vmatmul.f32.gmra.mxu0 %v901_v34  ;;  %1028 = vmatmul.f32.gmra.mxu2 %v920_v6 }
 0x13a   :  { %1396 = vperm.xlu2 %2077, %v1242_v51   ;;  %1391 = vperm.xlu0 %2075, %v1241_v52   ;;  %v1164_v51 = vld [vmem:[#allocation6 + $0x80] sm:$0xff]  ;;  %v1165_v52 = vld [vmem:[#allocation6 + $0x88] sm:$0xff] }
 0x140   :  { %1084 = vmatmul.f32.gmra.mxu1 %v901_v34  ;;  %1141 = vmatmul.f32.gmra.mxu3 %v920_v6 }
 0x141   :  { %974 = vmatmul.f32.gmra.mxu0 %v902_v7  ;;  %1031 = vmatmul.f32.gmra.mxu2 %v921_v53 }
 0x148   :  { %1087 = vmatmul.f32.gmra.mxu1 %v902_v7  ;;  %1144 = vmatmul.f32.gmra.mxu3 %v921_v53  ;;  %v1225_v7 = vld [vmem:[%s3766_s3 + $0x68] sm:$0xff]  ;;  %v1224_v53 = vld [vmem:[%s3766_s3 + $0x60] sm:$0xff] }
 0x149   :  { %977 = vmatmul.f32.gmra.mxu0 %v903_v54  ;;  %1311 = vperm.xlu1 %2076, %v1225_v7   ;;  %v1166_v7 = vld [vmem:[#allocation6 + $0x90] sm:$0xff] }
 0x14a   :  { %1306 = vperm.xlu2 %2077, %v1224_v53  }
 0x150   :  { %1090 = vmatmul.f32.gmra.mxu1 %v903_v54  ;;  %v1222_v54 = vld [vmem:[%s3766_s3 + $0x50] sm:$0xff] }
 0x151   :  { %980 = vmatmul.f32.gmra.mxu0 %v904_v8  ;;  %1296 = vperm.xlu0 %2075, %v1222_v54   ;;  %v1167_v54 = vld [vmem:[#allocation6 + $0x98] sm:$0xff] }
 0x158   :  { %1093 = vmatmul.f32.gmra.mxu1 %v904_v8 }
 0x159   :  { %983 = vmatmul.f32.gmra.mxu0 %v905_v56 }
 0x15e   :  { %v3207_v9 = vpop.f32.mrf.mxu0 }
 0x160   :  { %1096 = vmatmul.f32.gmra.mxu1 %v905_v56 }
 0x161   :  { %986 = vmatmul.f32.gmra.mxu0 %v906_v10 }
 0x164   :  { %v3212_v11 = vpop.f32.mrf.mxu2 }
 0x165   :  { %v3214_v57 = vpop.f32.mrf.mxu1 }
 0x166   :  { %v3216_v41 = vpop.f32.mrf.mxu0 }
 0x168   :  { %1099 = vmatmul.f32.gmra.mxu1 %v906_v10 }
 0x169   :  { %989 = vmatmul.f32.gmra.mxu0 %v907_v12 }
 0x16b   :  { %v3223_v59 = vpop.f32.mrf.mxu3 }
 0x16c   :  { %v3221_v58 = vpop.f32.mrf.mxu2 }
 0x16d   :  { %v3225_v60 = vpop.f32.mrf.mxu1 }
 0x16e   :  { %v3227_v61 = vpop.f32.mrf.mxu0 }
 0x170   :  { %1102 = vmatmul.f32.gmra.mxu1 %v907_v12  ;;  %v1240_v12 = vld [vmem:[%s3766_s3 + $0xe0] sm:$0xff] }
 0x171   :  { %992 = vmatmul.f32.gmra.mxu0 %v908_v25  ;;  %1386 = vperm.xlu2 %2077, %v1240_v12   ;;  %v1169_v12 = vld [vmem:[#allocation6 + $0xa8] sm:$0xff] }
 0x173   :  { %v3234_v27 = vpop.f32.mrf.mxu3 }
 0x174   :  { %v3232_v26 = vpop.f32.mrf.mxu2 }
 0x175   :  { %v3236_v62 = vpop.f32.mrf.mxu1 }
 0x176   :  { %v3238_v28 = vpop.f32.mrf.mxu0 }
 0x178   :  { %1105 = vmatmul.f32.gmra.mxu1 %v908_v25  ;;  %v1223_v25 = vld [vmem:[%s3766_s3 + $0x58] sm:$0xff] }
 0x179   :  { %1301 = vperm.xlu1 %2076, %v1223_v25  }
 0x17b   :  { %v3242_v3 = vpop.f32.mrf.mxu3 }
 0x17c   :  { %v3240_v63 = vpop.f32.mrf.mxu2 }
 0x17d   :  { %v3244_v4 = vpop.f32.mrf.mxu1 }
 0x17e   :  { %v3246_v15 = vpop.f32.mrf.mxu0 }
 0x183   :  { %v3250_v16 = vpop.f32.mrf.mxu3 }
 0x184   :  { %v3248_v29 = vpop.f32.mrf.mxu2 }
 0x185   :  { %v3252_v17 = vpop.f32.mrf.mxu1 }
 0x186   :  { %v3254_v20 = vpop.f32.mrf.mxu0 }
 0x18b   :  { %v3258_v13 = vpop.f32.mrf.mxu3 }
 0x18c   :  { %v3256_v23 = vpop.f32.mrf.mxu2 }
 0x18d   :  { %v3260_v19 = vpop.f32.mrf.mxu1 }
 0x18e   :  { %v3262_v14 = vpop.f32.mrf.mxu0 }
 0x193   :  { %v3264_v55 = vpop.f32.mrf.mxu3 }
 0x194   :  { %v1014_v30 = vpop.f32.mrf.mxu2 }
 0x195   :  { %v3266_v22 = vpop.f32.mrf.mxu1 }
 0x196   :  { %v3268_v32 = vpop.f32.mrf.mxu0 }
 0x19b   :  { %v3270_v18 = vpop.f32.mrf.mxu3 }
 0x19c   :  { %v1017_v24 = vpop.f32.mrf.mxu2 }
 0x19d   :  { %v3272_v2 = vpop.f32.mrf.mxu1 }
 0x19e   :  { %v3274_v39 = vpop.f32.mrf.mxu0 }
 0x1a3   :  { %v3276_v33 = vpop.f32.mrf.mxu3 }
 0x1a4   :  { %v1020_v31 = vpop.f32.mrf.mxu2 }
 0x1a5   :  { %v3278_v35 = vpop.f32.mrf.mxu1 }
 0x1a6   :  { %v3280_v1 = vpop.f32.mrf.mxu0 }
 0x1ab   :  { %v1133_v38 = vpop.f32.mrf.mxu3 }
 0x1ac   :  { %v1023_v37 = vpop.f32.mrf.mxu2 }
 0x1ad   :  { %v3282_v40 = vpop.f32.mrf.mxu1 }
 0x1ae   :  { %v3284_v42 = vpop.f32.mrf.mxu0 }
 0x1b3   :  { %v1136_v44 = vpop.f32.mrf.mxu3 }
 0x1b4   :  { %v1026_v5 = vpop.f32.mrf.mxu2 }
 0x1b5   :  { %v3289_v45 = vpop.f32.mrf.mxu1 }
 0x1b6   :  { %v3291_v46 = vpop.f32.mrf.mxu0 }
 0x1bb   :  { %v1139_v36 = vpop.f32.mrf.mxu3 }
 0x1bc   :  { %v1029_v21 = vpop.f32.mrf.mxu2 }
 0x1bd   :  { %v3296_v48 = vpop.f32.mrf.mxu1 }
 0x1be   :  { %v975_v49 = vpop.f32.mrf.mxu0 }
 0x1c3   :  { %v1142_v6 = vpop.f32.mrf.mxu3 }
 0x1c4   :  { %v1032_v34 = vpop.f32.mrf.mxu2 }
 0x1c5   :  { %v3316_v8 = vpop.f32.mrf.mxu1  ;;  %1517 = vmatpush.msrb.mxu3 %v1032_v34  ;;  %v3430_v34 = vpop.permute.xlu1 %1401 }
 0x1c6   :  { %v978_v56 = vpop.f32.mrf.mxu0  ;;  %3791 = vst [vmem:[#allocation14_spill] sm:$0xff] %v3430_v34  ;;  %v1201_v34 = vld [vmem:[#allocation6 + $0x1a8] sm:$0xff] }
 0x1c7   :  { %1518 = vmatpush.msrb.mxu3 %v1029_v21  ;;  %v1238_v21 = vld [vmem:[%s3766_s3 + $0xd0] sm:$0xff] }
 0x1c8   :  { %1376 = vperm.xlu0 %2075, %v1238_v21   ;;  %v1171_v21 = vld [vmem:[#allocation6 + $0xb8] sm:$0xff] }
 0x1c9   :  { %1519 = vmatpush.msrb.mxu3 %v1026_v5 }
 0x1cb   :  { %1520 = vmatpush.msrb.mxu3 %v1023_v37  ;;  %v1145_v10 = vpop.f32.mrf.mxu3 }
 0x1cc   :  { %1743 = vmatpush.msrb.mxu1 %v1145_v10 }
 0x1cd   :  { %v1091_v43 = vpop.f32.mrf.mxu1  ;;  %1521 = vmatpush.msrb.mxu3 %v1020_v31  ;;  %v1239_v31 = vld [vmem:[%s3766_s3 + $0xd8] sm:$0xff] }
 0x1ce   :  { %v981_v47 = vpop.f32.mrf.mxu0  ;;  %1744 = vmatpush.msrb.mxu1 %v1142_v6  ;;  %1381 = vperm.xlu1 %2076, %v1239_v31  }
 0x1cf   :  { %1522 = vmatpush.msrb.mxu3 %v1017_v24  ;;  %v1221_v24 = vld [vmem:[%s3766_s3 + $0x48] sm:$0xff] }
 0x1d0   :  { %1745 = vmatpush.msrb.mxu1 %v1139_v36  ;;  %1291 = vperm.xlu2 %2077, %v1221_v24   ;;  %v1162_v36 = vld [vmem:[#allocation6 + $0x70] sm:$0xff]  ;;  %v1173_v24 = vld [vmem:[#allocation6 + $0xc8] sm:$0xff] }
 0x1d1   :  { %1523 = vmatpush.msrb.mxu3 %v1014_v30 }
 0x1d2   :  { %1746 = vmatpush.msrb.mxu1 %v1136_v44  ;;  %v1161_v44 = vld [vmem:[#allocation6 + $0x68] sm:$0xff] }
 0x1d3   :  { %1524 = vmatpush.msrb.mxu3 %v3256_v23  ;;  %v1219_v23 = vld [vmem:[%s3766_s3 + $0x38] sm:$0xff] }
 0x1d4   :  { %1747 = vmatpush.msrb.mxu1 %v1133_v38  ;;  %1281 = vperm.xlu0 %2075, %v1219_v23   ;;  %v1159_v38 = vld [vmem:[#allocation6 + $0x58] sm:$0xff] }
 0x1d5   :  { %v1094_v37 = vpop.f32.mrf.mxu1  ;;  %1525 = vmatpush.msrb.mxu3 %v3248_v29 }
 0x1d6   :  { %v984_v5 = vpop.f32.mrf.mxu0  ;;  %1748 = vmatpush.msrb.mxu1 %v3276_v33  ;;  %v1156_v33 = vld [vmem:[#allocation6 + $0x40] sm:$0xff] }
 0x1d7   :  { %1404 = vmatpush.msrb.mxu2 %v984_v5  ;;  %1526 = vmatpush.msrb.mxu3 %v3240_v63  ;;  %v1220_v63 = vld [vmem:[%s3766_s3 + $0x40] sm:$0xff]  ;;  %v1172_v5 = vld [vmem:[#allocation6 + $0xc0] sm:$0xff] }
 0x1d8   :  { %1749 = vmatpush.msrb.mxu1 %v3270_v18  ;;  %1286 = vperm.xlu1 %2076, %v1220_v63   ;;  %v1153_v18 = vld [vmem:[#allocation6 + $0x28] sm:$0xff] }
 0x1d9   :  { %1405 = vmatpush.msrb.mxu2 %v981_v47  ;;  %1527 = vmatpush.msrb.mxu3 %v3232_v26  ;;  %v1236_v26 = vld [vmem:[%s3766_s3 + $0xc0] sm:$0xff] }
 0x1da   :  { %1750 = vmatpush.msrb.mxu1 %v3264_v55 }
 0x1db   :  { %1406 = vmatpush.msrb.mxu2 %v978_v56  ;;  %1528 = vmatpush.msrb.mxu3 %v3221_v58  ;;  %v1237_v58 = vld [vmem:[%s3766_s3 + $0xc8] sm:$0xff]  ;;  %v1168_v56 = vld [vmem:[#allocation6 + $0xa0] sm:$0xff] }
 0x1dc   :  { %1751 = vmatpush.msrb.mxu1 %v3258_v13  ;;  %1371 = vperm.xlu2 %2077, %v1237_v58   ;;  %v1175_v58 = vld [vmem:[#allocation6 + $0xd8] sm:$0xff] }
 0x1dd   :  { %1407 = vmatpush.msrb.mxu2 %v975_v49  ;;  %v1097_v29 = vpop.f32.mrf.mxu1  ;;  %1529 = vmatpush.msrb.mxu3 %v3212_v11  ;;  %v1235_v11 = vld [vmem:[%s3766_s3 + $0xb8] sm:$0xff] }
 0x1de   :  { %v987_v30 = vpop.f32.mrf.mxu0  ;;  %1630 = vmatpush.msrb.mxu0 %v1097_v29  ;;  %1752 = vmatpush.msrb.mxu1 %v3250_v16 }
 0x1df   :  { %1408 = vmatpush.msrb.mxu2 %v3291_v46  ;;  %1361 = vperm.xlu0 %2075, %v1235_v11  }
 0x1e0   :  { %1631 = vmatpush.msrb.mxu0 %v1094_v37  ;;  %1753 = vmatpush.msrb.mxu1 %v3242_v3  ;;  %v1216_v3 = vld [vmem:[%s3766_s3 + $0x20] sm:$0xff] }
 0x1e1   :  { %1409 = vmatpush.msrb.mxu2 %v3284_v42  ;;  %1366 = vperm.xlu1 %2076, %v1236_v26   ;;  %v1160_v42 = vld [vmem:[#allocation6 + $0x60] sm:$0xff] }
 0x1e2   :  { %1632 = vmatpush.msrb.mxu0 %v1091_v43  ;;  %1754 = vmatpush.msrb.mxu1 %v3234_v27  ;;  %v1218_v27 = vld [vmem:[%s3766_s3 + $0x30] sm:$0xff]  ;;  %v1170_v43 = vld [vmem:[#allocation6 + $0xb0] sm:$0xff] }
 0x1e3   :  { %1410 = vmatpush.msrb.mxu2 %v3280_v1  ;;  %v1158_v1 = vld [vmem:[#allocation6 + $0x50] sm:$0xff]  ;;  %v1230_v26 = vld [vmem:[%s3766_s3 + $0x90] sm:$0xff] }
 0x1e4   :  { %1633 = vmatpush.msrb.mxu0 %v3316_v8  ;;  %1755 = vmatpush.msrb.mxu1 %v3223_v59  ;;  %v1217_v59 = vld [vmem:[%s3766_s3 + $0x28] sm:$0xff]  ;;  %v3436_v8 = vpop.permute.xlu1 %1311 }
 0x1e5   :  { %1411 = vmatpush.msrb.mxu2 %v3274_v39  ;;  %v1100_v13 = vpop.f32.mrf.mxu1  ;;  %1276 = vperm.xlu2 %2077, %v1218_v27   ;;  %v1155_v39 = vld [vmem:[#allocation6 + $0x38] sm:$0xff] }
 0x1e6   :  { %v990_v16 = vpop.f32.mrf.mxu0  ;;  %1634 = vmatpush.msrb.mxu0 %v3296_v48  ;;  %v1163_v48 = vld [vmem:[#allocation6 + $0x78] sm:$0xff] }
 0x1e7   :  { %1412 = vmatpush.msrb.mxu2 %v3268_v32  ;;  %1266 = vperm.xlu0 %2075, %v1216_v3   ;;  %v1234_v32 = vld [vmem:[%s3766_s3 + $0xb0] sm:$0xff]  ;;  %v1177_v3 = vld [vmem:[#allocation6 + $0xe8] sm:$0xff] }
 0x1e8   :  { %1635 = vmatpush.msrb.mxu0 %v3289_v45  ;;  %v3422_v45 = vpop.permute.xlu0 %1321 }
 0x1e9   :  { %1413 = vmatpush.msrb.mxu2 %v3262_v14  ;;  %1271 = vperm.xlu1 %2076, %v1217_v59   ;;  %v1228_v59 = vld [vmem:[%s3766_s3 + $0x80] sm:$0xff] }
 0x1ea   :  { %1636 = vmatpush.msrb.mxu0 %v3282_v40  ;;  %v3420_v40 = vpop.permute.xlu2 %1396 }
 0x1eb   :  { %1414 = vmatpush.msrb.mxu2 %v3254_v20  ;;  %v1149_v20 = vld [vmem:[#allocation6 + $0x8] sm:$0xff]  ;;  %3789 = vst [vmem:[#allocation12_spill] sm:$0xff] %v3420_v40 }
 0x1ec   :  { %1637 = vmatpush.msrb.mxu0 %v3278_v35  ;;  %v1157_v35 = vld [vmem:[#allocation6 + $0x48] sm:$0xff]  ;;  %v3442_v47 = vpop.permute.xlu1 %1301 }
 0x1ed   :  { %1415 = vmatpush.msrb.mxu2 %v3246_v15  ;;  %v1103_v14 = vpop.f32.mrf.mxu1  ;;  %v1232_v15 = vld [vmem:[%s3766_s3 + $0xa0] sm:$0xff]  ;;  %1356 = vperm.xlu2 %2077, %v1234_v32  }
 0x1ee   :  { %v993_v55 = vpop.f32.mrf.mxu0  ;;  %1638 = vmatpush.msrb.mxu0 %v3272_v2  ;;  %v1154_v2 = vld [vmem:[#allocation6 + $0x30] sm:$0xff] }
 0x1ef   :  { %1416 = vmatpush.msrb.mxu2 %v3238_v28  ;;  %1530 = vmatpush.msrb.mxu3 %v993_v55  ;;  %v1148_v28 = vld [vmem:[#allocation6] sm:$0xff] }
 0x1f0   :  { %1639 = vmatpush.msrb.mxu0 %v3266_v22  ;;  %1346 = vperm.xlu0 %2075, %v1232_v15   ;;  %v3426_v49 = vpop.permute.xlu0 %1316  ;;  %v1179_v15 = vld [vmem:[#allocation6 + $0xf8] sm:$0xff] }
 0x1f1   :  { %1417 = vmatpush.msrb.mxu2 %v3227_v61  ;;  %1531 = vmatpush.msrb.mxu3 %v990_v16  ;;  %v1233_v61 = vld [vmem:[%s3766_s3 + $0xa8] sm:$0xff] }
 0x1f2   :  { %1640 = vmatpush.msrb.mxu0 %v3260_v19  ;;  %1351 = vperm.xlu1 %2076, %v1233_v61   ;;  %v1214_v19 = vld [vmem:[%s3766_s3 + $0x10] sm:$0xff]  ;;  %v3424_v46 = vpop.permute.xlu2 %1306 }
 0x1f3   :  { %1418 = vmatpush.msrb.mxu2 %v3216_v41  ;;  %1532 = vmatpush.msrb.mxu3 %v987_v30  ;;  %v1215_v41 = vld [vmem:[%s3766_s3 + $0x18] sm:$0xff]  ;;  %v1174_v30 = vld [vmem:[#allocation6 + $0xd0] sm:$0xff]  ;;  %v1180_v61 = vld [vmem:[#allocation6 + $0x100] sm:$0xff] }
 0x1f4   :  { %1641 = vmatpush.msrb.mxu0 %v3252_v17  ;;  %1533 = vmatmul.f32.vlgmr.msrb.gmra.mxu3 %v1149_v20  ;;  %v1150_v17 = vld [vmem:[#allocation6 + $0x10] sm:$0xff] }
 0x1f5   :  { %1419 = vmatpush.msrb.mxu2 %v3207_v9  ;;  %v1106_v22 = vpop.f32.mrf.mxu1  ;;  %v1213_v9 = vld [vmem:[%s3766_s3 + $0x8] sm:$0xff]  ;;  %1261 = vperm.xlu2 %2077, %v1215_v41   ;;  %v1181_v41 = vld [vmem:[#allocation6 + $0x108] sm:$0xff] }
 0x1f6   :  { %1420 = vmatmul.f32.vlgmr.msrb.gmra.mxu2 %v1148_v28  ;;  %1642 = vmatpush.msrb.mxu0 %v3244_v4  ;;  %v1151_v4 = vld [vmem:[#allocation6 + $0x18] sm:$0xff] }
 0x1f7   :  { %1756 = vmatpush.msrb.mxu1 %v1106_v22 }
 0x1f8   :  { %1643 = vmatpush.msrb.mxu0 %v3236_v62  ;;  %1251 = vperm.xlu0 %2075, %v1213_v9   ;;  %v1231_v62 = vld [vmem:[%s3766_s3 + $0x98] sm:$0xff]  ;;  %v3432_v6 = vpop.permute.xlu0 %1391 }
 0x1f9   :  { %1757 = vmatpush.msrb.mxu1 %v1103_v14  ;;  %3792 = vst [vmem:[#allocation15_spill] sm:$0xff] %v3432_v6  ;;  %v1178_v14 = vld [vmem:[#allocation6 + $0xf0] sm:$0xff]  ;;  %v1203_v6 = vld [vmem:[#allocation6 + $0x1b8] sm:$0xff] }
 0x1fa   :  { %1644 = vmatpush.msrb.mxu0 %v3225_v60  ;;  %1256 = vperm.xlu1 %2076, %v1214_v19   ;;  %v1152_v60 = vld [vmem:[#allocation6 + $0x20] sm:$0xff]  ;;  %v3428_v50 = vpop.permute.xlu2 %1386 }
 0x1fb   :  { %1758 = vmatpush.msrb.mxu1 %v1100_v13  ;;  %3790 = vst [vmem:[#allocation13_spill] sm:$0xff] %v3428_v50  ;;  %v1176_v13 = vld [vmem:[#allocation6 + $0xe0] sm:$0xff] }
 0x1fc   :  { %1759 = vmatmul.f32.vlgmr.msrb.gmra.mxu1 %v1149_v20  ;;  %1645 = vmatpush.msrb.mxu0 %v3214_v57  ;;  %v1212_v57 = vld [vmem:[%s3766_s3] sm:$0xff]  ;;  %v1229_v20 = vld [vmem:[%s3766_s3 + $0x88] sm:$0xff]  ;;  %v1200_v50 = vld [vmem:[#allocation6 + $0x1a0] sm:$0xff] }
 0x1fd   :  { %1646 = vmatmul.f32.vlgmr.msrb.gmra.mxu0 %v1148_v28  ;;  %1536 = vmatmul.f32.gmra.mxu3 %v1151_v4 }
 0x1fe   :  { %1423 = vmatmul.f32.gmra.mxu2 %v1150_v17  ;;  %1341 = vperm.xlu2 %2077, %v1231_v62  }
 0x200   :  { %v3438_v10 = vpop.permute.xlu0 %1296  ;;  %1331 = vperm.xlu0 %2075, %v1229_v20   ;;  %v1189_v20 = vld [vmem:[#allocation6 + $0x148] sm:$0xff] }
 0x202   :  { %1336 = vperm.xlu1 %2076, %v1230_v26  }
 0x204   :  { %1762 = vmatmul.f32.gmra.mxu1 %v1151_v4 }
 0x205   :  { %1649 = vmatmul.f32.gmra.mxu0 %v1150_v17  ;;  %1539 = vmatmul.f32.gmra.mxu3 %v1153_v18 }
 0x206   :  { %1426 = vmatmul.f32.gmra.mxu2 %v1152_v60  ;;  %1246 = vperm.xlu2 %2077, %v1212_v57   ;;  %v1182_v57 = vld [vmem:[#allocation6 + $0x110] sm:$0xff] }
 0x20a   :  { %1326 = vperm.xlu1 %2076, %v1228_v59  }
 0x20c   :  { %1765 = vmatmul.f32.gmra.mxu1 %v1153_v18 }
 0x20d   :  { %1652 = vmatmul.f32.gmra.mxu0 %v1152_v60  ;;  %1542 = vmatmul.f32.gmra.mxu3 %v1155_v39 }
 0x20e   :  { %1429 = vmatmul.f32.gmra.mxu2 %v1154_v2 }
 0x214   :  { %1768 = vmatmul.f32.gmra.mxu1 %v1155_v39  ;;  %v1183_v39 = vld [vmem:[#allocation6 + $0x118] sm:$0xff] }
 0x215   :  { %1655 = vmatmul.f32.gmra.mxu0 %v1154_v2  ;;  %1545 = vmatmul.f32.gmra.mxu3 %v1157_v35 }
 0x216   :  { %1432 = vmatmul.f32.gmra.mxu2 %v1156_v33 }
 0x21c   :  { %1771 = vmatmul.f32.gmra.mxu1 %v1157_v35 }
 0x21d   :  { %1658 = vmatmul.f32.gmra.mxu0 %v1156_v33  ;;  %1548 = vmatmul.f32.gmra.mxu3 %v1159_v38 }
 0x21e   :  { %1435 = vmatmul.f32.gmra.mxu2 %v1158_v1 }
 0x224   :  { %1774 = vmatmul.f32.gmra.mxu1 %v1159_v38 }
 0x225   :  { %1661 = vmatmul.f32.gmra.mxu0 %v1158_v1  ;;  %1551 = vmatmul.f32.gmra.mxu3 %v1161_v44 }
 0x226   :  { %1438 = vmatmul.f32.gmra.mxu2 %v1160_v42 }
 0x22a   :  { %v3434_v53 = vpop.permute.xlu2 %1291 }
 0x22c   :  { %1777 = vmatmul.f32.gmra.mxu1 %v1161_v44 }
 0x22d   :  { %1664 = vmatmul.f32.gmra.mxu0 %v1160_v42  ;;  %1554 = vmatmul.f32.gmra.mxu3 %v1163_v48 }
 0x22e   :  { %1441 = vmatmul.f32.gmra.mxu2 %v1162_v36 }
 0x234   :  { %1780 = vmatmul.f32.gmra.mxu1 %v1163_v48  ;;  %v1184_v48 = vld [vmem:[#allocation6 + $0x120] sm:$0xff] }
 0x235   :  { %1667 = vmatmul.f32.gmra.mxu0 %v1162_v36  ;;  %1557 = vmatmul.f32.gmra.mxu3 %v1165_v52 }
 0x236   :  { %1444 = vmatmul.f32.gmra.mxu2 %v1164_v51  ;;  %v3440_v25 = vpop.permute.xlu2 %1371 }
 0x237   :  { %3793 = vst [vmem:[#allocation16_spill] sm:$0xff] %v3440_v25 }
 0x23a   :  { %v3444_v31 = vpop.permute.xlu0 %1376 }
 0x23b   :  { %3794 = vst [vmem:[#allocation17_spill] sm:$0xff] %v3444_v31  ;;  %v1199_v31 = vld [vmem:[#allocation6 + $0x198] sm:$0xff] }
 0x23c   :  { %1783 = vmatmul.f32.gmra.mxu1 %v1165_v52  ;;  %v1185_v52 = vld [vmem:[#allocation6 + $0x128] sm:$0xff] }
 0x23d   :  { %1670 = vmatmul.f32.gmra.mxu0 %v1164_v51  ;;  %1560 = vmatmul.f32.gmra.mxu3 %v1167_v54 }
 0x23e   :  { %1447 = vmatmul.f32.gmra.mxu2 %v1166_v7 }
 0x23f   :  { %v3446_v37 = vpop.permute.xlu2 %1276 }
 0x240   :  { %3795 = vst [vmem:[#allocation18_spill] sm:$0xff] %v3446_v37  ;;  %v3448_v23 = vpop.permute.xlu1 %1381 }
 0x241   :  { %3796 = vst [vmem:[#allocation19_spill] sm:$0xff] %v3448_v23 }
 0x244   :  { %1786 = vmatmul.f32.gmra.mxu1 %v1167_v54 }
 0x245   :  { %1673 = vmatmul.f32.gmra.mxu0 %v1166_v7  ;;  %1563 = vmatmul.f32.gmra.mxu3 %v1169_v12 }
 0x246   :  { %1450 = vmatmul.f32.gmra.mxu2 %v1168_v56  ;;  %v3450_v63 = vpop.permute.xlu0 %1281 }
 0x247   :  { %v3452_v29 = vpop.permute.xlu2 %1356 }
 0x248   :  { %3797 = vst [vmem:[#allocation20_spill] sm:$0xff] %v3452_v29 }
 0x24a   :  { %v3454_v11 = vpop.permute.xlu1 %1286 }
 0x24c   :  { %1789 = vmatmul.f32.gmra.mxu1 %v1169_v12 }
 0x24d   :  { %1676 = vmatmul.f32.gmra.mxu0 %v1168_v56  ;;  %1566 = vmatmul.f32.gmra.mxu3 %v1171_v21 }
 0x24e   :  { %1453 = vmatmul.f32.gmra.mxu2 %v1170_v43 }
 0x24f   :  { %v3461_v27 = vpop.permute.xlu2 %1261 }
 0x250   :  { %3799 = vst [vmem:[#allocation22_spill] sm:$0xff] %v3461_v27 }
 0x251   :  { %v3459_v16 = vpop.permute.xlu0 %1361 }
 0x252   :  { %3798 = vst [vmem:[#allocation21_spill] sm:$0xff] %v3459_v16  ;;  %v1204_v16 = vld [vmem:[#allocation6 + $0x1c0] sm:$0xff] }
 0x253   :  { %v3466_v55 = vpop.permute.xlu1 %1366 }
 0x254   :  { %1792 = vmatmul.f32.gmra.mxu1 %v1171_v21  ;;  %3800 = vst [vmem:[#allocation23_spill] sm:$0xff] %v3466_v55 }
 0x255   :  { %1679 = vmatmul.f32.gmra.mxu0 %v1170_v43  ;;  %1569 = vmatmul.f32.gmra.mxu3 %v1173_v24 }
 0x256   :  { %1456 = vmatmul.f32.gmra.mxu2 %v1172_v5 }
 0x258   :  { %v3470_v28 = vpop.permute.xlu2 %1341 }
 0x259   :  { %v3468_v32 = vpop.permute.xlu0 %1266 }
 0x25a   :  { %3801 = vst [vmem:[#allocation24_spill] sm:$0xff] %v3468_v32 }
 0x25b   :  { %v3475_v22 = vpop.permute.xlu1 %1271 }
 0x25c   :  { %1795 = vmatmul.f32.gmra.mxu1 %v1173_v24  ;;  %3802 = vst [vmem:[#allocation25_spill] sm:$0xff] %v3475_v22 }
 0x25d   :  { %1682 = vmatmul.f32.gmra.mxu0 %v1172_v5  ;;  %1572 = vmatmul.f32.gmra.mxu3 %v1175_v58  ;;  %v1186_v5 = vld [vmem:[#allocation6 + $0x130] sm:$0xff] }
 0x25e   :  { %1459 = vmatmul.f32.gmra.mxu2 %v1174_v30 }
 0x260   :  { %v3479_v17 = vpop.permute.xlu2 %1246 }
 0x261   :  { %3803 = vst [vmem:[#allocation26_spill] sm:$0xff] %v3479_v17 }
 0x262   :  { %v3477_v9 = vpop.permute.xlu0 %1346 }
 0x264   :  { %1798 = vmatmul.f32.gmra.mxu1 %v1175_v58  ;;  %v3488_v33 = vpop.permute.xlu1 %1351 }
 0x265   :  { %1685 = vmatmul.f32.gmra.mxu0 %v1174_v30  ;;  %1575 = vmatmul.f32.gmra.mxu3 %v1177_v3  ;;  %3806 = vst [vmem:[#allocation29_spill] sm:$0xff] %v3488_v33  ;;  %v1187_v30 = vld [vmem:[#allocation6 + $0x138] sm:$0xff] }
 0x266   :  { %1462 = vmatmul.f32.gmra.mxu2 %v1176_v13 }
 0x26a   :  { %v3490_v35 = vpop.permute.xlu0 %1251 }
 0x26b   :  { %3807 = vst [vmem:[#allocation30_spill] sm:$0xff] %v3490_v35 }
 0x26c   :  { %1801 = vmatmul.f32.gmra.mxu1 %v1177_v3  ;;  %v3499_v7 = vpop.permute.xlu1 %1256 }
 0x26d   :  { %1688 = vmatmul.f32.gmra.mxu0 %v1176_v13  ;;  %1578 = vmatmul.f32.gmra.mxu3 %v1179_v15  ;;  %3810 = vst [vmem:[#allocation33_spill] sm:$0xff] %v3499_v7 }
 0x26e   :  { %1465 = vmatmul.f32.gmra.mxu2 %v1178_v14 }
 0x274   :  { %1804 = vmatmul.f32.gmra.mxu1 %v1179_v15 }
 0x275   :  { %1691 = vmatmul.f32.gmra.mxu0 %v1178_v14  ;;  %1581 = vmatmul.f32.gmra.mxu3 %v1181_v41  ;;  %v1188_v14 = vld [vmem:[#allocation6 + $0x140] sm:$0xff] }
 0x276   :  { %1468 = vmatmul.f32.gmra.mxu2 %v1180_v61 }
 0x277   :  { %v1534_v19 = vpop.f32.mrf.mxu3 }
 0x279   :  { %v1421_v4 = vpop.f32.mrf.mxu2  ;;  %v3482_v60 = vpop.f32.mrf.mxu1 }
 0x27a   :  { %v1422_v62 = vadd.f32 %v1421_v4, %v3479_v17  ;;  %3804 = vst [vmem:[#allocation27_spill] sm:$0xff] %v3482_v60  ;;  %v3484_v18 = vpop.f32.mrf.mxu0  ;;  %v1205_v60 = vld [vmem:[#allocation6 + $0x1c8] sm:$0xff]  ;;  %v1207_v17 = vld [vmem:[#allocation6 + $0x1d8] sm:$0xff] }
 0x27b   :  { %3805 = vst [vmem:[#allocation28_spill] sm:$0xff] %v3484_v18 }
 0x27c   :  { %v3486_v2 = vadd.f32 %v1534_v19, %v1422_v62  ;;  %1807 = vmatmul.f32.gmra.mxu1 %v1181_v41 }
 0x27d   :  { %1694 = vmatmul.f32.gmra.mxu0 %v1180_v61  ;;  %1584 = vmatmul.f32.gmra.mxu3 %v1183_v39 }
 0x27e   :  { %1471 = vmatmul.f32.gmra.mxu2 %v1182_v57 }
 0x280   :  { %v1537_v42 = vpop.f32.mrf.mxu3 }
 0x281   :  { %v1424_v1 = vpop.f32.mrf.mxu2  ;;  %v3493_v44 = vpop.f32.mrf.mxu1 }
 0x282   :  { %v1425_v38 = vadd.f32 %v1424_v1, %v3490_v35  ;;  %3808 = vst [vmem:[#allocation31_spill] sm:$0xff] %v3493_v44  ;;  %v3495_v36 = vpop.f32.mrf.mxu0  ;;  %v1191_v1 = vld [vmem:[#allocation6 + $0x158] sm:$0xff]  ;;  %v1209_v35 = vld [vmem:[#allocation6 + $0x1e8] sm:$0xff] }
 0x283   :  { %3809 = vst [vmem:[#allocation32_spill] sm:$0xff] %v3495_v36 }
 0x284   :  { %v3497_v51 = vadd.f32 %v1537_v42, %v1425_v38  ;;  %1810 = vmatmul.f32.gmra.mxu1 %v1183_v39 }
 0x285   :  { %1697 = vmatmul.f32.gmra.mxu0 %v1182_v57  ;;  %1587 = vmatmul.f32.gmra.mxu3 %v1185_v52  ;;  %v1190_v57 = vld [vmem:[#allocation6 + $0x150] sm:$0xff] }
 0x286   :  { %1474 = vmatmul.f32.gmra.mxu2 %v1184_v48 }
 0x288   :  { %v1540_v12 = vpop.f32.mrf.mxu3 }
 0x289   :  { %v1427_v54 = vpop.f32.mrf.mxu2  ;;  %v3502_v43 = vpop.f32.mrf.mxu1 }
 0x28a   :  { %v1428_v56 = vadd.f32 %v1427_v54, %v3499_v7  ;;  %3811 = vst [vmem:[#allocation34_spill] sm:$0xff] %v3502_v43  ;;  %v3504_v21 = vpop.f32.mrf.mxu0 }
 0x28b   :  { %3812 = vst [vmem:[#allocation35_spill] sm:$0xff] %v3504_v21 }
 0x28c   :  { %v3506_v24 = vadd.f32 %v1540_v12, %v1428_v56  ;;  %1813 = vmatmul.f32.gmra.mxu1 %v1185_v52  ;;  %v1192_v56 = vld [vmem:[#allocation6 + $0x160] sm:$0xff] }
 0x28d   :  { %1700 = vmatmul.f32.gmra.mxu0 %v1184_v48  ;;  %1590 = vmatmul.f32.gmra.mxu3 %v1187_v30 }
 0x28e   :  { %1477 = vmatmul.f32.gmra.mxu2 %v1186_v5 }
 0x290   :  { %v1543_v13 = vpop.f32.mrf.mxu3 }
 0x291   :  { %v1430_v58 = vpop.f32.mrf.mxu2  ;;  %v3509_v3 = vpop.f32.mrf.mxu1 }
 0x292   :  { %v1431_v26 = vadd.f32 %v1430_v58, %v3461_v27  ;;  %3813 = vst [vmem:[#allocation36_spill] sm:$0xff] %v3509_v3  ;;  %v3511_v59 = vpop.f32.mrf.mxu0 }
 0x293   :  { %3814 = vst [vmem:[#allocation37_spill] sm:$0xff] %v3511_v59  ;;  %v3582_v59 = vpop.permute.xlu1 %1336 }
 0x294   :  { %v3513_v15 = vadd.f32 %v1543_v13, %v1431_v26  ;;  %1816 = vmatmul.f32.gmra.mxu1 %v1187_v30 }
 0x295   :  { %1703 = vmatmul.f32.gmra.mxu0 %v1186_v5  ;;  %1593 = vmatmul.f32.gmra.mxu3 %v1189_v20  ;;  %v1193_v5 = vld [vmem:[#allocation6 + $0x168] sm:$0xff] }
 0x296   :  { %1480 = vmatmul.f32.gmra.mxu2 %v1188_v14 }
 0x298   :  { %v1546_v4 = vpop.f32.mrf.mxu3 }
 0x299   :  { %v1433_v61 = vpop.f32.mrf.mxu2  ;;  %v3516_v19 = vpop.f32.mrf.mxu1 }
 0x29a   :  { %v1434_v41 = vadd.f32 %v1433_v61, %v3468_v32  ;;  %3815 = vst [vmem:[#allocation38_spill] sm:$0xff] %v3516_v19  ;;  %v3518_v62 = vpop.f32.mrf.mxu0 }
 0x29b   :  { %3816 = vst [vmem:[#allocation39_spill] sm:$0xff] %v3518_v62 }
 0x29c   :  { %v3520_v39 = vadd.f32 %v1546_v4, %v1434_v41  ;;  %1819 = vmatmul.f32.gmra.mxu1 %v1189_v20  ;;  %v1194_v20 = vld [vmem:[#allocation6 + $0x170] sm:$0xff]  ;;  %v1195_v41 = vld [vmem:[#allocation6 + $0x178] sm:$0xff] }
 0x29d   :  { %1706 = vmatmul.f32.gmra.mxu0 %v1188_v14  ;;  %1596 = vmatmul.f32.gmra.mxu3 %v1191_v1 }
 0x29e   :  { %1483 = vmatmul.f32.gmra.mxu2 %v1190_v57 }
 0x2a0   :  { %v1549_v48 = vpop.f32.mrf.mxu3 }
 0x2a1   :  { %v1436_v38 = vpop.f32.mrf.mxu2  ;;  %v3523_v52 = vpop.f32.mrf.mxu1 }
 0x2a2   :  { %v1437_v42 = vadd.f32 %v1436_v38, %v3475_v22  ;;  %3817 = vst [vmem:[#allocation40_spill] sm:$0xff] %v3523_v52  ;;  %v3525_v54 = vpop.f32.mrf.mxu0  ;;  %v1211_v52 = vld [vmem:[#allocation6 + $0x1f8] sm:$0xff] }
 0x2a3   :  { %3818 = vst [vmem:[#allocation41_spill] sm:$0xff] %v3525_v54 }
 0x2a4   :  { %v3527_v12 = vadd.f32 %v1549_v48, %v1437_v42  ;;  %1822 = vmatmul.f32.gmra.mxu1 %v1191_v1  ;;  %v1196_v48 = vld [vmem:[#allocation6 + $0x180] sm:$0xff] }
 0x2a5   :  { %1709 = vmatmul.f32.gmra.mxu0 %v1190_v57  ;;  %1599 = vmatmul.f32.gmra.mxu3 %v1193_v5 }
 0x2a6   :  { %1486 = vmatmul.f32.gmra.mxu2 %v1192_v56 }
 0x2a8   :  { %v1552_v26 = vpop.f32.mrf.mxu3 }
 0x2a9   :  { %v1439_v30 = vpop.f32.mrf.mxu2  ;;  %v3530_v13 = vpop.f32.mrf.mxu1 }
 0x2aa   :  { %v1440_v58 = vadd.f32 %v1439_v30, %v3446_v37  ;;  %3819 = vst [vmem:[#allocation42_spill] sm:$0xff] %v3530_v13  ;;  %v3532_v14 = vpop.f32.mrf.mxu0 }
 0x2ab   :  { %3820 = vst [vmem:[#allocation43_spill] sm:$0xff] %v3532_v14 }
 0x2ac   :  { %v3534_v61 = vadd.f32 %v1552_v26, %v1440_v58  ;;  %1825 = vmatmul.f32.gmra.mxu1 %v1193_v5 }
 0x2ad   :  { %1712 = vmatmul.f32.gmra.mxu0 %v1192_v56  ;;  %1602 = vmatmul.f32.gmra.mxu3 %v1195_v41 }
 0x2ae   :  { %1489 = vmatmul.f32.gmra.mxu2 %v1194_v20 }
 0x2b0   :  { %v1555_v1 = vpop.f32.mrf.mxu3 }
 0x2b1   :  { %v1442_v4 = vpop.f32.mrf.mxu2  ;;  %v3537_v38 = vpop.f32.mrf.mxu1 }
 0x2b2   :  { %v1443_v57 = vadd.f32 %v1442_v4, %v3450_v63  ;;  %3821 = vst [vmem:[#allocation44_spill] sm:$0xff] %v3537_v38  ;;  %v3539_v42 = vpop.f32.mrf.mxu0  ;;  %v1198_v4 = vld [vmem:[#allocation6 + $0x190] sm:$0xff] }
 0x2b4   :  { %v3541_v30 = vadd.f32 %v1555_v1, %v1443_v57  ;;  %1828 = vmatmul.f32.gmra.mxu1 %v1195_v41 }
 0x2b5   :  { %1715 = vmatmul.f32.gmra.mxu0 %v1194_v20  ;;  %1605 = vmatmul.f32.gmra.mxu3 %v1197_v0 }
 0x2b6   :  { %1492 = vmatmul.f32.gmra.mxu2 %v1196_v48 }
 0x2b8   :  { %v3545_v56 = vpop.f32.mrf.mxu3 }
 0x2b9   :  { %v3543_v5 = vpop.f32.mrf.mxu2  ;;  %v1784_v58 = vpop.f32.mrf.mxu1 }
 0x2ba   :  { %v1671_v26 = vpop.f32.mrf.mxu0 }
 0x2bb   :  { %v1672_v25 = vadd.f32 %v1671_v26, %v3454_v11  ;;  %v1202_v26 = vld [vmem:[#allocation6 + $0x1b0] sm:$0xff] }
 0x2bc   :  { %1831 = vmatmul.f32.gmra.mxu1 %v1197_v0 }
 0x2bd   :  { %v3548_v23 = vadd.f32 %v1784_v58, %v1672_v25  ;;  %1718 = vmatmul.f32.gmra.mxu0 %v1196_v48  ;;  %1608 = vmatmul.f32.gmra.mxu3 %v1199_v31 }
 0x2be   :  { %1495 = vmatmul.f32.gmra.mxu2 %v1198_v4 }
 0x2bf   :  { %3822 = vst [vmem:[#allocation45_spill] sm:$0xff] %v3548_v23 }
 0x2c0   :  { %v3552_v20 = vpop.f32.mrf.mxu3 }
 0x2c1   :  { %v3550_v41 = vpop.f32.mrf.mxu2  ;;  %v3554_v57 = vpop.f32.mrf.mxu1 }
 0x2c2   :  { %3823 = vst [vmem:[#allocation46_spill] sm:$0xff] %v3554_v57  ;;  %v3556_v1 = vpop.f32.mrf.mxu0  ;;  %v1449_v57 = vadd.f32 %v3550_v41, %v3434_v53 }
 0x2c4   :  { %1834 = vmatmul.f32.gmra.mxu1 %v1199_v31 }
 0x2c5   :  { %1721 = vmatmul.f32.gmra.mxu0 %v1198_v4  ;;  %1611 = vmatmul.f32.gmra.mxu3 %v1201_v34 }
 0x2c6   :  { %1498 = vmatmul.f32.gmra.mxu2 %v1200_v50 }
 0x2c8   :  { %v3560_v25 = vpop.f32.mrf.mxu3 }
 0x2c9   :  { %v3558_v0 = vpop.f32.mrf.mxu2  ;;  %v3562_v48 = vpop.f32.mrf.mxu1 }
 0x2ca   :  { %v3564_v58 = vpop.f32.mrf.mxu0 }
 0x2cc   :  { %1837 = vmatmul.f32.gmra.mxu1 %v1201_v34 }
 0x2cd   :  { %1724 = vmatmul.f32.gmra.mxu0 %v1200_v50  ;;  %1614 = vmatmul.f32.gmra.mxu3 %v1203_v6  ;;  %v1206_v50 = vld [vmem:[#allocation6 + $0x1d0] sm:$0xff] }
 0x2ce   :  { %1501 = vmatmul.f32.gmra.mxu2 %v1202_v26 }
 0x2d0   :  { %v1567_v31 = vpop.f32.mrf.mxu3 }
 0x2d1   :  { %v1454_v40 = vpop.f32.mrf.mxu2  ;;  %v3566_v55 = vpop.f32.mrf.mxu1 }
 0x2d2   :  { %v3568_v4 = vpop.f32.mrf.mxu0 }
 0x2d4   :  { %1840 = vmatmul.f32.gmra.mxu1 %v1203_v6 }
 0x2d5   :  { %1727 = vmatmul.f32.gmra.mxu0 %v1202_v26  ;;  %1617 = vmatmul.f32.gmra.mxu3 %v1205_v60  ;;  %v1208_v26 = vld [vmem:[#allocation6 + $0x1e0] sm:$0xff] }
 0x2d6   :  { %1504 = vmatmul.f32.gmra.mxu2 %v1204_v16 }
 0x2d8   :  { %v1570_v43 = vpop.f32.mrf.mxu3 }
 0x2d9   :  { %v1457_v44 = vpop.f32.mrf.mxu2  ;;  %v3570_v18 = vpop.f32.mrf.mxu1 }
 0x2da   :  { %v3572_v34 = vpop.f32.mrf.mxu0  ;;  %v1458_v33 = vadd.f32 %v1457_v44, %v3424_v46 }
 0x2dc   :  { %1843 = vmatmul.f32.gmra.mxu1 %v1205_v60  ;;  %v1571_v14 = vadd.f32 %v1570_v43, %v1458_v33 }
 0x2dd   :  { %1730 = vmatmul.f32.gmra.mxu0 %v1204_v16  ;;  %1620 = vmatmul.f32.gmra.mxu3 %v1207_v17  ;;  %v1210_v16 = vld [vmem:[#allocation6 + $0x1f0] sm:$0xff] }
 0x2de   :  { %1507 = vmatmul.f32.gmra.mxu2 %v1206_v50 }
 0x2e0   :  { %v1573_v3 = vpop.f32.mrf.mxu3 }
 0x2e1   :  { %v1460_v29 = vpop.f32.mrf.mxu2  ;;  %v3574_v36 = vpop.f32.mrf.mxu1 }
 0x2e2   :  { %v3576_v6 = vpop.f32.mrf.mxu0 }
 0x2e4   :  { %1846 = vmatmul.f32.gmra.mxu1 %v1207_v17 }
 0x2e5   :  { %1733 = vmatmul.f32.gmra.mxu0 %v1206_v50  ;;  %1623 = vmatmul.f32.gmra.mxu3 %v1209_v35  ;;  %v1461_v50 = vadd.f32 %v1460_v29, %v3436_v8  ;;  %v1452_v29 = vadd.f32 %v3558_v0, %v3438_v10  ;;  %v1880_v0 = vmax.f32 %v1571_v14, 0.0 }
 0x2e6   :  { %1510 = vmatmul.f32.gmra.mxu2 %v1208_v26 }
 0x2e7   :  { %v1574_v54 = vadd.f32 %v1573_v3, %v1461_v50  ;;  %v1446_v3 = vadd.f32 %v3543_v5, %v3454_v11 }
 0x2e8   :  { %v1576_v21 = vpop.f32.mrf.mxu3 }
 0x2e9   :  { %v1463_v19 = vpop.f32.mrf.mxu2  ;;  %v3578_v7 = vpop.f32.mrf.mxu1 }
 0x2ea   :  { %v3580_v60 = vpop.f32.mrf.mxu0  ;;  %v1464_v17 = vadd.f32 %v1463_v19, %v3426_v49  ;;  %v1327_v19 = vpop.permute.xlu1 %1326 }
 0x2ec   :  { %1849 = vmatmul.f32.gmra.mxu1 %v1209_v35  ;;  %v1577_v35 = vadd.f32 %v1576_v21, %v1464_v17  ;;  %v1882_v21 = vmax.f32 %v1574_v54, 0.0  ;;  %v1559_v54 = vadd.f32 %v3545_v56, %v1446_v3  ;;  %v1868_v56 = vmax.f32 %v3534_v61, 0.0 }
 0x2ed   :  { %1736 = vmatmul.f32.gmra.mxu0 %v1208_v26  ;;  %1626 = vmatmul.f32.gmra.mxu3 %v1211_v52  ;;  %v1455_v26 = vadd.f32 %v1454_v40, %v3442_v47  ;;  %v1864_v3 = vmax.f32 %v3520_v39, 0.0  ;;  %v1862_v61 = vmax.f32 %v3513_v15, 0.0  ;;  %v1858_v39 = vmax.f32 %v3497_v51, 0.0 }
 0x2ee   :  { %1513 = vmatmul.f32.gmra.mxu2 %v1210_v16  ;;  %v1681_v51 = vadd.f32 %v3568_v4, %v3442_v47 }
 0x2ef   :  { %v1568_v44 = vadd.f32 %v1567_v31, %v1455_v26 }
 0x2f0   :  { %v1579_v13 = vpop.f32.mrf.mxu3 }
 0x2f1   :  { %v1466_v27 = vpop.f32.mrf.mxu2  ;;  %v3587_v62 = vpop.f32.mrf.mxu1  ;;  %v1878_v41 = vmax.f32 %v1568_v44, 0.0 }
 0x2f2   :  { %v1467_v23 = vadd.f32 %v1466_v27, %v3422_v45  ;;  %v1692_v32 = vpop.f32.mrf.mxu0  ;;  %v1884_v27 = vmax.f32 %v1577_v35, 0.0  ;;  %v1872_v35 = vmax.f32 %v1559_v54, 0.0 }
 0x2f4   :  { %v1580_v38 = vadd.f32 %v1579_v13, %v1467_v23  ;;  %1852 = vmatmul.f32.gmra.mxu1 %v1211_v52 }
 0x2f5   :  { %1739 = vmatmul.f32.gmra.mxu0 %v1210_v16 }
 0x2f6   :  { %v1886_v22 = vmax.f32 %v1580_v38, 0.0  ;;  %v1565_v38 = vadd.f32 %v3560_v25, %v1452_v29 }
 0x2f8   :  { %1928 = vmatpush.msra.mxu2 %v1886_v22  ;;  %v1582_v52 = vpop.f32.mrf.mxu3  ;;  %v1562_v22 = vadd.f32 %v3552_v20, %v1449_v57  ;;  %v1876_v16 = vmax.f32 %v1565_v38, 0.0  ;;  %v1870_v20 = vmax.f32 %v3541_v30, 0.0 }
 0x2f9   :  { %v1469_v37 = vpop.f32.mrf.mxu2  ;;  %v1808_v40 = vpop.f32.mrf.mxu1 }
 0x2fa   :  { %v1470_v23 = vadd.f32 %v1469_v37, %v1327_v19  ;;  %1929 = vmatpush.msra.mxu2 %v1884_v27  ;;  %v1695_v13 = vpop.f32.mrf.mxu0  ;;  %v1332_v37 = vpop.permute.xlu0 %1331  ;;  %v1874_v5 = vmax.f32 %v1562_v22, 0.0  ;;  %v1866_v27 = vmax.f32 %v3527_v12, 0.0  ;;  %v1690_v12 = vadd.f32 %v3580_v60, %v3426_v49 }
 0x2fb   :  { %v1696_v33 = vadd.f32 %v1695_v13, %v1327_v19 }
 0x2fc   :  { %v3598_v43 = vadd.f32 %v1582_v52, %v1470_v23  ;;  %1930 = vmatpush.msra.mxu2 %v1882_v21  ;;  %v1693_v52 = vadd.f32 %v1692_v32, %v3422_v45  ;;  %v1860_v45 = vmax.f32 %v3506_v24, 0.0  ;;  %v1687_v32 = vadd.f32 %v3576_v6, %v3436_v8 }
 0x2fd   :  { %v3601_v31 = vadd.f32 %v1808_v40, %v1696_v33  ;;  %v1803_v49 = vadd.f32 %v3578_v7, %v1690_v12  ;;  %v1856_v24 = vmax.f32 %v3486_v2, 0.0  ;;  %v1794_v2 = vadd.f32 %v3566_v55, %v1681_v51  ;;  %v3824_v55 = vld [vmem:[#allocation46_spill] sm:$0xff] }
 0x2fe   :  { %1931 = vmatpush.msra.mxu2 %v1880_v0  ;;  %v1806_v0 = vadd.f32 %v3587_v62, %v1693_v52  ;;  %v1800_v6 = vadd.f32 %v3574_v36, %v1687_v32 }
 0x300   :  { %1932 = vmatpush.msra.mxu2 %v1878_v41  ;;  %v1585_v14 = vpop.f32.mrf.mxu3  ;;  %v1684_v41 = vadd.f32 %v3572_v34, %v3424_v46  ;;  %v1887_v62 = vmax.f32 %v1806_v0, 0.0  ;;  %v1678_v46 = vadd.f32 %v3564_v58, %v3438_v10  ;;  %v1885_v34 = vmax.f32 %v1803_v49, 0.0  ;;  %v3834_v0 = vld [vmem:[#allocation45_spill] sm:$0xff] }
 0x301   :  { %v1472_v11 = vpop.f32.mrf.mxu2  ;;  %v1811_v25 = vpop.f32.mrf.mxu1 }
 0x302   :  { %v1473_v17 = vadd.f32 %v1472_v11, %v1332_v37  ;;  %1933 = vmatpush.msra.mxu2 %v1876_v16  ;;  %v1698_v50 = vpop.f32.mrf.mxu0  ;;  %v1797_v7 = vadd.f32 %v3570_v18, %v1684_v41  ;;  %v1883_v16 = vmax.f32 %v1800_v6, 0.0  ;;  %v3837_v41 = vld [vmem:[#allocation40_spill] sm:$0xff]  ;;  %v3840_v6 = vld [vmem:[#allocation38_spill] sm:$0xff] }
 0x303   :  { %v1699_v26 = vadd.f32 %v1698_v50, %v1332_v37  ;;  %v3825_v50 = vld [vmem:[#allocation18_spill] sm:$0xff] }
 0x304   :  { %v3604_v19 = vadd.f32 %v1585_v14, %v1473_v17  ;;  %1934 = vmatpush.msra.mxu2 %v1874_v5  ;;  %v1791_v5 = vadd.f32 %v3562_v48, %v1678_v46  ;;  %v1881_v17 = vmax.f32 %v1797_v7, 0.0  ;;  %v1879_v14 = vmax.f32 %v1794_v2, 0.0 }
 0x305   :  { %v3607_v57 = vadd.f32 %v1811_v25, %v1699_v26 }
 0x306   :  { %1935 = vmatpush.msra.mxu2 %v1872_v35  ;;  %v3826_v35 = vld [vmem:[#allocation43_spill] sm:$0xff]  ;;  %v1877_v48 = vmax.f32 %v1791_v5, 0.0 }
 0x307   :  { %v1666_v26 = vadd.f32 %v3826_v35, %v3825_v50 }
 0x308   :  { %1936 = vmatpush.msra.mxu2 %v1870_v20  ;;  %v1588_v21 = vpop.f32.mrf.mxu3  ;;  %v3827_v20 = vld [vmem:[#allocation25_spill] sm:$0xff] }
 0x309   :  { %v1475_v29 = vpop.f32.mrf.mxu2  ;;  %v1814_v23 = vpop.f32.mrf.mxu1 }
 0x30a   :  { %v1476_v44 = vadd.f32 %v1475_v29, %v3582_v59  ;;  %1937 = vmatpush.msra.mxu2 %v1868_v56  ;;  %v1701_v40 = vpop.f32.mrf.mxu0  ;;  %v3828_v56 = vld [vmem:[#allocation41_spill] sm:$0xff] }
 0x30b   :  { %v1702_v30 = vadd.f32 %v1701_v40, %v3582_v59  ;;  %v1663_v29 = vadd.f32 %v3828_v56, %v3827_v20  ;;  %v3831_v40 = vld [vmem:[#allocation24_spill] sm:$0xff]  ;;  %v3848_v20 = vld [vmem:[#allocation31_spill] sm:$0xff] }
 0x30c   :  { %v3615_v13 = vadd.f32 %v1588_v21, %v1476_v44  ;;  %1938 = vmatpush.msra.mxu2 %v1866_v27 }
 0x30d   :  { %v3618_v38 = vadd.f32 %v1814_v23, %v1702_v30  ;;  %v1776_v49 = vadd.f32 %v3837_v41, %v1663_v29 }
 0x30e   :  { %1939 = vmatpush.msra.mxu2 %v1864_v3  ;;  %v3832_v3 = vld [vmem:[#allocation39_spill] sm:$0xff] }
 0x30f   :  { %v1660_v30 = vadd.f32 %v3832_v3, %v3831_v40 }
 0x310   :  { %1940 = vmatpush.msra.mxu2 %v1862_v61  ;;  %v1591_v15 = vpop.f32.mrf.mxu3  ;;  %v3833_v61 = vld [vmem:[#allocation42_spill] sm:$0xff] }
 0x311   :  { %v1478_v59 = vpop.f32.mrf.mxu2  ;;  %v1817_v22 = vpop.f32.mrf.mxu1  ;;  %v1779_v12 = vadd.f32 %v3833_v61, %v1666_v26  ;;  %v1773_v46 = vadd.f32 %v3840_v6, %v1660_v30 }
 0x312   :  { %v1479_v33 = vadd.f32 %v1478_v59, %v3470_v28  ;;  %1941 = vmatpush.msra.mxu2 %v1860_v45  ;;  %v1704_v60 = vpop.f32.mrf.mxu0  ;;  %v1873_v45 = vmax.f32 %v3834_v0, 0.0 }
 0x313   :  { %v1705_v37 = vadd.f32 %v1704_v60, %v3470_v28  ;;  %v1675_v28 = vadd.f32 %v3556_v1, %v3434_v53  ;;  %v1669_v53 = vadd.f32 %v3539_v42, %v3450_v63  ;;  %v3830_v63 = vld [vmem:[#allocation29_spill] sm:$0xff]  ;;  %v1869_v7 = vmax.f32 %v1779_v12, 0.0 }
 0x314   :  { %v3633_v8 = vadd.f32 %v1591_v15, %v1479_v33  ;;  %1942 = vmatpush.msra.mxu2 %v1858_v39  ;;  %v3835_v33 = vld [vmem:[#allocation22_spill] sm:$0xff]  ;;  %v3836_v15 = vld [vmem:[#allocation37_spill] sm:$0xff]  ;;  %v1865_v50 = vmax.f32 %v1773_v46, 0.0 }
 0x315   :  { %v3638_v54 = vadd.f32 %v1817_v22, %v1705_v37  ;;  %v1788_v1 = vadd.f32 %v3824_v55, %v1675_v28  ;;  %v1657_v22 = vadd.f32 %v3836_v15, %v3835_v33  ;;  %v3839_v37 = vld [vmem:[#allocation35_spill] sm:$0xff]  ;;  %v3842_v28 = vld [vmem:[#allocation32_spill] sm:$0xff] }
 0x316   :  { %1943 = vmatpush.msra.mxu2 %v1856_v24  ;;  %v3838_v24 = vld [vmem:[#allocation33_spill] sm:$0xff] }
 0x317   :  { %v1875_v44 = vmax.f32 %v1788_v1, 0.0  ;;  %v1654_v51 = vadd.f32 %v3839_v37, %v3838_v24  ;;  %v3847_v1 = vld [vmem:[#allocation34_spill] sm:$0xff] }
 0x318   :  { %1968 = vmatpush.msrb.mxu2 %v1887_v62  ;;  %v1594_v36 = vpop.f32.mrf.mxu3 }
 0x319   :  { %v1481_v11 = vpop.f32.mrf.mxu2  ;;  %v1820_v4 = vpop.f32.mrf.mxu1 }
 0x31a   :  { %1969 = vmatpush.msrb.mxu2 %v1885_v34  ;;  %v1482_v47 = vadd.f32 %v1481_v11, %v3477_v9  ;;  %v1707_v10 = vpop.f32.mrf.mxu0  ;;  %v3841_v34 = vld [vmem:[#allocation30_spill] sm:$0xff] }
 0x31b   :  { %v1708_v18 = vadd.f32 %v1707_v10, %v3477_v9  ;;  %v3829_v9 = vld [vmem:[#allocation44_spill] sm:$0xff]  ;;  %v1651_v2 = vadd.f32 %v3842_v28, %v3841_v34 }
 0x31c   :  { %1970 = vmatpush.msrb.mxu2 %v1883_v16  ;;  %v3649_v58 = vadd.f32 %v1594_v36, %v1482_v47  ;;  %v1782_v27 = vadd.f32 %v3829_v9, %v1669_v53  ;;  %v3843_v16 = vld [vmem:[#allocation36_spill] sm:$0xff]  ;;  %v1867_v47 = vmax.f32 %v1776_v49, 0.0 }
 0x31d   :  { %v3654_v25 = vadd.f32 %v1820_v4, %v1708_v18  ;;  %v1770_v11 = vadd.f32 %v3843_v16, %v1657_v22  ;;  %v3844_v4 = vld [vmem:[#allocation20_spill] sm:$0xff]  ;;  %v3845_v18 = vld [vmem:[#allocation26_spill] sm:$0xff]  ;;  %v1764_v56 = vadd.f32 %v3848_v20, %v1651_v2 }
 0x31e   :  { %1971 = vmatpush.msrb.mxu2 %v1881_v17  ;;  %v1871_v62 = vmax.f32 %v1782_v27, 0.0  ;;  %v3846_v53 = vld [vmem:[#allocation28_spill] sm:$0xff]  ;;  %v3849_v27 = vld [vmem:[#allocation27_spill] sm:$0xff] }
 0x31f   :  { %v1648_v55 = vadd.f32 %v3846_v53, %v3845_v18  ;;  %v1863_v29 = vmax.f32 %v1770_v11, 0.0 }
 0x320   :  { %1972 = vmatpush.msrb.mxu2 %v1879_v14  ;;  %v1597_v23 = vpop.f32.mrf.mxu3  ;;  %v1767_v14 = vadd.f32 %v3847_v1, %v1654_v51 }
 0x321   :  { %v1484_v21 = vpop.f32.mrf.mxu2  ;;  %v1823_v52 = vpop.f32.mrf.mxu1 }
 0x322   :  { %1973 = vmatpush.msrb.mxu2 %v1877_v48  ;;  %v1485_v42 = vadd.f32 %v1484_v21, %v3830_v63  ;;  %v1710_v32 = vpop.f32.mrf.mxu0  ;;  %v1861_v21 = vmax.f32 %v1767_v14, 0.0  ;;  %v3852_v14 = vld [vmem:[#allocation12_spill] sm:$0xff] }
 0x323   :  { %v1711_v59 = vadd.f32 %v1710_v32, %v3830_v63  ;;  %v1859_v63 = vmax.f32 %v1764_v56, 0.0  ;;  %v3854_v56 = vld [vmem:[#allocation14_spill] sm:$0xff] }
 0x324   :  { %1974 = vmatpush.msrb.mxu2 %v1875_v44  ;;  %v3667_v39 = vadd.f32 %v1597_v23, %v1485_v42  ;;  %v1761_v44 = vadd.f32 %v3849_v27, %v1648_v55  ;;  %v3850_v23 = vld [vmem:[#allocation21_spill] sm:$0xff] }
 0x325   :  { %v3672_v60 = vadd.f32 %v1823_v52, %v1711_v59  ;;  %v3851_v59 = vld [vmem:[#allocation23_spill] sm:$0xff] }
 0x326   :  { %1975 = vmatpush.msrb.mxu2 %v1873_v45  ;;  %v1857_v3 = vmax.f32 %v1761_v44, 0.0  ;;  %v3855_v44 = vld [vmem:[#allocation13_spill] sm:$0xff] }
 0x328   :  { %1976 = vmatpush.msrb.mxu2 %v1871_v62  ;;  %v1600_v17 = vpop.f32.mrf.mxu3 }
 0x329   :  { %v1487_v36 = vpop.f32.mrf.mxu2  ;;  %v1826_v10 = vpop.f32.mrf.mxu1 }
 0x32a   :  { %1977 = vmatpush.msrb.mxu2 %v1869_v7  ;;  %v1488_v5 = vadd.f32 %v1487_v36, %v3844_v4  ;;  %v1713_v35 = vpop.f32.mrf.mxu0 }
 0x32b   :  { %v1714_v26 = vadd.f32 %v1713_v35, %v3844_v4 }
 0x32c   :  { %1978 = vmatpush.msrb.mxu2 %v1867_v47  ;;  %v3685_v48 = vadd.f32 %v1600_v17, %v1488_v5 }
 0x32d   :  { %v3688_v9 = vadd.f32 %v1826_v10, %v1714_v26  ;;  %v3853_v26 = vld [vmem:[#allocation15_spill] sm:$0xff] }
 0x32e   :  { %1979 = vmatpush.msrb.mxu2 %v1865_v50 }
 0x330   :  { %1980 = vmatpush.msrb.mxu2 %v1863_v29  ;;  %v1603_v40 = vpop.f32.mrf.mxu3 }
 0x331   :  { %v1490_v42 = vpop.f32.mrf.mxu2  ;;  %v1829_v61 = vpop.f32.mrf.mxu1 }
 0x332   :  { %1981 = vmatpush.msrb.mxu2 %v1861_v21  ;;  %v1491_v52 = vadd.f32 %v1490_v42, %v3850_v23  ;;  %v1716_v30 = vpop.f32.mrf.mxu0 }
 0x333   :  { %v1717_v12 = vadd.f32 %v1716_v30, %v3850_v23  ;;  %v3856_v23 = vld [vmem:[#allocation19_spill] sm:$0xff] }
 0x334   :  { %1982 = vmatpush.msrb.mxu2 %v1859_v63  ;;  %v3693_v0 = vadd.f32 %v1603_v40, %v1491_v52 }
 0x335   :  { %v3695_v45 = vadd.f32 %v1829_v61, %v1717_v12  ;;  %v3857_v61 = vld [vmem:[#allocation17_spill] sm:$0xff] }
 0x336   :  { %1983 = vmatpush.msrb.mxu2 %v1857_v3 }
 0x338   :  { %v1606_v15 = vpop.f32.mrf.mxu3 }
 0x339   :  { %v1493_v32 = vpop.f32.mrf.mxu2  ;;  %v1832_v62 = vpop.f32.mrf.mxu1 }
 0x33a   :  { %v1494_v33 = vadd.f32 %v1493_v32, %v3851_v59  ;;  %v1719_v22 = vpop.f32.mrf.mxu0 }
 0x33b   :  { %v1720_v41 = vadd.f32 %v1719_v22, %v3851_v59 }
 0x33c   :  { %v1607_v49 = vadd.f32 %v1606_v15, %v1494_v33  ;;  %v3858_v33 = vld [vmem:[#allocation16_spill] sm:$0xff] }
 0x33d   :  { %v3699_v24 = vadd.f32 %v1832_v62, %v1720_v41 }
 0x340   :  { %v1609_v51 = vpop.f32.mrf.mxu3 }
 0x341   :  { %v1496_v37 = vpop.f32.mrf.mxu2  ;;  %v3703_v28 = vpop.f32.mrf.mxu1 }
 0x342   :  { %v3701_v7 = vpop.f32.mrf.mxu0  ;;  %v1497_v15 = vadd.f32 %v1496_v37, %v3858_v33  ;;  %v1902_v37 = vmax.f32 %v3693_v0, 0.0  ;;  %v1892_v0 = vmax.f32 %v3615_v13, 0.0 }
 0x348   :  { %v1612_v46 = vpop.f32.mrf.mxu3 }
 0x349   :  { %v1499_v6 = vpop.f32.mrf.mxu2  ;;  %v3707_v36 = vpop.f32.mrf.mxu1 }
 0x34a   :  { %v3705_v16 = vpop.f32.mrf.mxu0  ;;  %v1500_v12 = vadd.f32 %v1499_v6, %v3857_v61  ;;  %v1904_v6 = vmax.f32 %v1607_v49, 0.0 }
 0x350   :  { %v1615_v2 = vpop.f32.mrf.mxu3 }
 0x351   :  { %v1502_v34 = vpop.f32.mrf.mxu2  ;;  %v3711_v10 = vpop.f32.mrf.mxu1 }
 0x352   :  { %v3709_v5 = vpop.f32.mrf.mxu0  ;;  %v1503_v52 = vadd.f32 %v1502_v34, %v3856_v23 }
 0x353   :  { %v1729_v13 = vadd.f32 %v3709_v5, %v3856_v23 }
 0x354   :  { %v1616_v22 = vadd.f32 %v1615_v2, %v1503_v52  ;;  %v1900_v2 = vmax.f32 %v3685_v48, 0.0 }
 0x358   :  { %v1618_v47 = vpop.f32.mrf.mxu3 }
 0x359   :  { %v1505_v11 = vpop.f32.mrf.mxu2  ;;  %v3713_v1 = vpop.f32.mrf.mxu1 }
 0x35a   :  { %v1731_v55 = vpop.f32.mrf.mxu0  ;;  %v1506_v21 = vadd.f32 %v1505_v11, %v3855_v44 }
 0x35c   :  { %v1619_v32 = vadd.f32 %v1618_v47, %v1506_v21 }
 0x35e   :  { %v1912_v11 = vmax.f32 %v1619_v32, 0.0  ;;  %v1895_v32 = vmax.f32 %v3638_v54, 0.0 }
 0x360   :  { %v1621_v17 = vpop.f32.mrf.mxu3 }
 0x361   :  { %v1508_v4 = vpop.f32.mrf.mxu2  ;;  %v1847_v62 = vpop.f32.mrf.mxu1 }
 0x362   :  { %v1509_v20 = vadd.f32 %v1508_v4, %v3853_v26  ;;  %v1734_v40 = vpop.f32.mrf.mxu0  ;;  %v1613_v4 = vadd.f32 %v1612_v46, %v1500_v12  ;;  %v1898_v46 = vmax.f32 %v3667_v39, 0.0  ;;  %v1890_v39 = vmax.f32 %v3604_v19, 0.0 }
 0x363   :  { %v1735_v48 = vadd.f32 %v1734_v40, %v3853_v26  ;;  %v1726_v19 = vadd.f32 %v3705_v16, %v3857_v61  ;;  %v1905_v61 = vmax.f32 %v3699_v24, 0.0  ;;  %v1891_v24 = vmax.f32 %v3607_v57, 0.0 }
 0x364   :  { %v1622_v3 = vadd.f32 %v1621_v17, %v1509_v20  ;;  %v1908_v34 = vmax.f32 %v1613_v4, 0.0 }
 0x365   :  { %v1839_v5 = vadd.f32 %v3707_v36, %v1726_v19  ;;  %v1899_v36 = vmax.f32 %v3672_v60, 0.0 }
 0x366   :  { %v1914_v41 = vmax.f32 %v1622_v3, 0.0 }
 0x367   :  { %v1909_v16 = vmax.f32 %v1839_v5, 0.0 }
 0x368   :  { %v1624_v53 = vpop.f32.mrf.mxu3 }
 0x369   :  { %v1511_v18 = vpop.f32.mrf.mxu2  ;;  %v1850_v47 = vpop.f32.mrf.mxu1 }
 0x36a   :  { %v1512_v50 = vadd.f32 %v1511_v18, %v3852_v14  ;;  %v1610_v18 = vadd.f32 %v1609_v51, %v1497_v15  ;;  %v1737_v17 = vpop.f32.mrf.mxu0  ;;  %v1896_v51 = vmax.f32 %v3649_v58, 0.0  ;;  %v1920_v58 = vld [vmem:[%s3767_s4] sm:$0x3] }
 0x36b   :  { %v1925_v52 = vperm.slane %v1920_v58, 1 }
 0x36c   :  { %v1625_v63 = vadd.f32 %v1624_v53, %v1512_v50  ;;  %v1910_v53 = vmax.f32 %v1616_v22, 0.0  ;;  %v1906_v50 = vmax.f32 %v1610_v18, 0.0 }
 0x36e   :  { %v1916_v59 = vmax.f32 %v1625_v63, 0.0  ;;  %v1924_v63 = vperm.slane %v1920_v58, 0 }
 0x370   :  { %v1627_v27 = vpop.f32.mrf.mxu3  ;;  %1944 = vmatmul.f32.vlgmr.msra.gmra.mxu2 %v1924_v63 }
 0x371   :  { %v1514_v35 = vpop.f32.mrf.mxu2  ;;  %v1853_v49 = vpop.f32.mrf.mxu1 }
 0x372   :  { %v1515_v29 = vadd.f32 %v1514_v35, %v3854_v56  ;;  %v1740_v35 = vpop.f32.mrf.mxu0 }
 0x373   :  { %v1741_v20 = vadd.f32 %v1740_v35, %v3854_v56  ;;  %v1732_v56 = vadd.f32 %v1731_v55, %v3855_v44  ;;  %v1842_v55 = vadd.f32 %v3711_v10, %v1729_v13  ;;  %v1901_v10 = vmax.f32 %v3688_v9, 0.0 }
 0x374   :  { %v1628_v42 = vadd.f32 %v1627_v27, %v1515_v29  ;;  %v1894_v29 = vmax.f32 %v3633_v8, 0.0  ;;  %v1738_v27 = vadd.f32 %v1737_v17, %v3852_v14  ;;  %v1848_v14 = vadd.f32 %v1847_v62, %v1735_v48 }
 0x375   :  { %v1854_v21 = vadd.f32 %v1853_v49, %v1741_v20  ;;  %v1845_v40 = vadd.f32 %v3713_v1, %v1732_v56  ;;  %v1911_v12 = vmax.f32 %v1842_v55, 0.0 }
 0x376   :  { %v1918_v30 = vmax.f32 %v1628_v42, 0.0  ;;  %v1851_v8 = vadd.f32 %v1850_v47, %v1738_v27  ;;  %v1888_v42 = vmax.f32 %v3598_v43, 0.0  ;;  %v1723_v43 = vadd.f32 %v3701_v7, %v3858_v33 }
 0x377   :  { %v1919_v26 = vmax.f32 %v1854_v21, 0.0  ;;  %v1915_v44 = vmax.f32 %v1848_v14, 0.0  ;;  %v1913_v23 = vmax.f32 %v1845_v40, 0.0  ;;  %v1903_v7 = vmax.f32 %v3695_v45, 0.0 }
 0x378   :  { %1948 = vmatpush.msra.mxu3 %v1918_v30  ;;  %v1917_v3 = vmax.f32 %v1851_v8, 0.0  ;;  %v1836_v30 = vadd.f32 %v3703_v28, %v1723_v43  ;;  %1984 = vmatmul.f32.vlgmr.msrb.gmra.mxu2 %v1924_v63  ;;  %v1897_v28 = vmax.f32 %v3654_v25, 0.0  ;;  %v1889_v45 = vmax.f32 %v3601_v31, 0.0 }
 0x379   :  { %v1922_v25 = vstv %s3768_s5 }
 0x37a   :  { %1949 = vmatpush.msra.mxu3 %v1916_v59  ;;  %v1907_v1 = vmax.f32 %v1836_v30, 0.0  ;;  %v1893_v59 = vmax.f32 %v3618_v38, 0.0 }
 0x37c   :  { %1950 = vmatpush.msra.mxu3 %v1914_v41  ;;  %v3859_v41 = vlaneseq }
 0x37e   :  { %1951 = vmatpush.msra.mxu3 %v1912_v11  ;;  %vm2016_vm1 = vcmp.lt.s32.totalorder %v3859_v41, 256 }
 0x380   :  { %1952 = vmatpush.msra.mxu3 %v1910_v53 }
 0x382   :  { %1953 = vmatpush.msra.mxu3 %v1908_v34 }
 0x384   :  { %1954 = vmatpush.msra.mxu3 %v1906_v50 }
 0x386   :  { %1955 = vmatpush.msra.mxu3 %v1904_v6 }
 0x388   :  { %1956 = vmatpush.msra.mxu3 %v1902_v37 }
 0x38a   :  { %1957 = vmatpush.msra.mxu3 %v1900_v2 }
 0x38c   :  { %1958 = vmatpush.msra.mxu3 %v1898_v46 }
 0x38e   :  { %1959 = vmatpush.msra.mxu3 %v1896_v51 }
 0x390   :  { %1960 = vmatpush.msra.mxu3 %v1894_v29 }
 0x392   :  { %1961 = vmatpush.msra.mxu3 %v1892_v0 }
 0x394   :  { %1962 = vmatpush.msra.mxu3 %v1890_v39 }
 0x396   :  { %1963 = vmatpush.msra.mxu3 %v1888_v42 }
 0x397   :  { %1964 = vmatmul.f32.vlgmr.msra.gmra.mxu3 %v1925_v52 }
 0x398   :  { %1988 = vmatpush.msrb.mxu3 %v1919_v26 }
 0x39a   :  { %1989 = vmatpush.msrb.mxu3 %v1917_v3 }
 0x39c   :  { %1990 = vmatpush.msrb.mxu3 %v1915_v44 }
 0x39e   :  { %1991 = vmatpush.msrb.mxu3 %v1913_v23 }
 0x3a0   :  { %1992 = vmatpush.msrb.mxu3 %v1911_v12 }
 0x3a2   :  { %1993 = vmatpush.msrb.mxu3 %v1909_v16 }
 0x3a4   :  { %1994 = vmatpush.msrb.mxu3 %v1907_v1 }
 0x3a6   :  { %1995 = vmatpush.msrb.mxu3 %v1905_v61 }
 0x3a8   :  { %1996 = vmatpush.msrb.mxu3 %v1903_v7 }
 0x3aa   :  { %1997 = vmatpush.msrb.mxu3 %v1901_v10 }
 0x3ac   :  { %1998 = vmatpush.msrb.mxu3 %v1899_v36 }
 0x3ae   :  { %1999 = vmatpush.msrb.mxu3 %v1897_v28 }
 0x3b0   :  { %2000 = vmatpush.msrb.mxu3 %v1895_v32 }
 0x3b2   :  { %2001 = vmatpush.msrb.mxu3 %v1893_v59 }
 0x3b4   :  { %2002 = vmatpush.msrb.mxu3 %v1891_v24 }
 0x3b6   :  { %2003 = vmatpush.msrb.mxu3 %v1889_v45 }
 0x3b7   :  { %2004 = vmatmul.f32.vlgmr.msrb.gmra.mxu3 %v1925_v52 }
 0x3f3   :  { %v1945_v9 = vpop.f32.mrf.mxu2 }
 0x3f4   :  { %v1946_v15 = vadd.f32 %v1945_v9, %v1922_v25 }
 0x3fb   :  { %v1985_v33 = vpop.f32.mrf.mxu2 }
 0x3fc   :  { %v1986_v54 = vadd.f32 %v1985_v33, %v1922_v25 }
 0x41a   :  { %v1965_v60 = vpop.f32.mrf.mxu3 }
 0x41b   :  { %v1966_v31 = vadd.f32 %v1965_v60, %v1946_v15 }
 0x43a   :  { %v2005_v22 = vpop.f32.mrf.mxu3 }
 0x43b   :  { %v2006_v38 = vadd.f32 %v2005_v22, %v1986_v54 }
 0x43d   :  { %v2010_v57 = vrot.slane %v2006_v38, 7 }
 0x43f   :  { %v2012_v62 = vsel %vm2011_vm0, %v1966_v31, %v2010_v57 }
 0x440   :  { %2018 = vst.msk [vmem:[#allocation8] sm:$0x3] %vm2016_vm1, %v2012_v62 }
 0x441   :  { %2029 = dma.vmem_to_hbm [thread:$0]  %s2025_s7, 32, %s2027_s2, [#allocation5]  }
 0x442   :  { %2154 = dma.done.wait [#allocation5], 32  }
 0x443   :  { %2155 = vsyncadd [#allocation5], 4294967264 }
 0x444   :  { %2034 = vsyncpa [#allocation4], 1 }
 0x445   :  { %2035 = vsyncpa [#allocation7], 1 }
 0x446   :  { %2036 = vsyncpa [#allocation5], 1 }

</bundles_post_ra>
